<compile_context>
chip_gen: v7x
topology: tpu7x:2x2x1
jax: 0.10.0
libtpu: 0.0.40
codegen_flags: <defaults>
</compile_context>

<pallas_src>
import math

import jax
import jax.numpy as jnp
from jax.experimental import pallas as pl
from jax.experimental.pallas import tpu as pltpu


def _attention_kernel(x_ref, wq_ref, wk_ref, wv_ref, wp_ref, bp_ref, o_ref,
                      q_scr, k_scr, v_scr, ctx_scr):
    """One (batch, query-tile) grid step.

    x_ref  : (1, N, C) f32   -- full sequence of this batch element (reused across query tiles)
    wq/wk/wv/wp_ref : (C, C) bf16  (scale folded into wq)
    bp_ref : (1, C) f32
    o_ref  : (1, tq, C)
    q_scr  : (H, tq, hd) bf16 scratch
    k_scr, v_scr : (H, N, hd) bf16 scratch (persist across query tiles of one batch element)
    ctx_scr: (tq, C) bf16 scratch
    """
    f32 = jnp.float32
    bf16 = jnp.bfloat16
    N, C = x_ref.shape[1], x_ref.shape[2]
    H, tq, hd = q_scr.shape
    qi = pl.program_id(1)

    # ---- K/V projection once per batch element (lane-dense, full MXU width) ----
    @pl.when(qi == 0)
    def _():
        xf = x_ref[0].astype(bf16)                                       # (N, C)
        k2 = jnp.dot(xf, wk_ref[...], preferred_element_type=f32).astype(bf16)   # (N, C)
        v2 = jnp.dot(xf, wv_ref[...], preferred_element_type=f32).astype(bf16)   # (N, C)
        # Head split is a pure relayout (sliced copies), no hd-wide matmuls.
        for h in range(H):
            k_scr[h] = k2[:, h * hd:(h + 1) * hd]
            v_scr[h] = v2[:, h * hd:(h + 1) * hd]

    # ---- Q projection for this query tile (softmax scale already folded into wq) ----
    q0 = pl.multiple_of(qi * tq, tq)
    xq = x_ref[0, pl.ds(q0, tq), :].astype(bf16)                         # (tq, C)
    q2 = jnp.dot(xq, wq_ref[...], preferred_element_type=f32).astype(bf16)
    for h in range(H):
        q_scr[h] = q2[:, h * hd:(h + 1) * hd]

    # ---- attention scores + numerically stable softmax (normalize after P@V) ----
    s = jnp.einsum('hqd,hkd->hqk', q_scr[...], k_scr[...],
                   preferred_element_type=f32)                           # (H, tq, N)
    s = s - jnp.max(s, axis=-1, keepdims=True)
    p = jnp.exp(s)
    denom = jnp.sum(p, axis=-1, keepdims=True)                           # (H, tq, 1)
    # attn_drop is identity (drop ratio 0.0 / eval mode).

    ctx = jnp.einsum('hqk,hkd->hqd', p.astype(bf16), v_scr[...],
                     preferred_element_type=f32)                         # (H, tq, hd)
    ctx = (ctx * pl.reciprocal(denom, approx=True)).astype(bf16)

    # ---- fold heads back onto the lane axis; head reduction happens inside the MXU ----
    for h in range(H):
        ctx_scr[:, h * hd:(h + 1) * hd] = ctx[h]
    out = jnp.dot(ctx_scr[...], wp_ref[...], preferred_element_type=f32) + bp_ref[...]
    # proj_drop is identity (drop ratio 0.0 / eval mode).
    o_ref[0] = out.astype(o_ref.dtype)


def _pick_tq(N):
    """Largest query tile (multiple of 8) that divides N; falls back to the full sequence."""
    for t in (256, 128, 64, 32, 16, 8):
        if N % t == 0 and t < N:
            return t
    return N


def attention_forward(x, w_qkv, w_proj, b_proj, *, num_heads, scale):
    """x: (B, N, C) f32; w_qkv: (C, 3C); w_proj: (C, C) (both in x @ W layout);
    b_proj: (C,). Returns (B, N, C) in x.dtype."""
    B, N, C = x.shape
    H = num_heads
    hd = C // H
    assert C == H * hd

    tq = _pick_tq(N)
    nq = N // tq

    # ---- host-side one-time weight prep: lane-dense bf16 MXU operands ----
    wq = (w_qkv[:, 0 * C:1 * C] * scale).astype(jnp.bfloat16)   # scale folded into q-projection
    wk = w_qkv[:, 1 * C:2 * C].astype(jnp.bfloat16)
    wv = w_qkv[:, 2 * C:3 * C].astype(jnp.bfloat16)
    wp = w_proj.astype(jnp.bfloat16)
    bp = b_proj.reshape(1, C).astype(jnp.float32)

    return pl.pallas_call(
        _attention_kernel,
        out_shape=jax.ShapeDtypeStruct((B, N, C), x.dtype),
        grid_spec=pltpu.PrefetchScalarGridSpec(
            num_scalar_prefetch=0,
            grid=(B, nq),
            in_specs=[
                # Full sequence per batch element (block index constant across qi -> fetched once).
                pl.BlockSpec((1, N, C), lambda b, q: (b, 0, 0)),
                pl.BlockSpec((C, C), lambda b, q: (0, 0)),     # wq
                pl.BlockSpec((C, C), lambda b, q: (0, 0)),     # wk
                pl.BlockSpec((C, C), lambda b, q: (0, 0)),     # wv
                pl.BlockSpec((C, C), lambda b, q: (0, 0)),     # wp
                pl.BlockSpec((1, C), lambda b, q: (0, 0)),     # proj bias
            ],
            out_specs=pl.BlockSpec((1, tq, C), lambda b, q: (b, q, 0)),
            scratch_shapes=[
                pltpu.VMEM((H, tq, hd), jnp.bfloat16),   # q (head-major)
                pltpu.VMEM((H, N, hd), jnp.bfloat16),    # k (head-major, per batch element)
                pltpu.VMEM((H, N, hd), jnp.bfloat16),    # v (head-major, per batch element)
                pltpu.VMEM((tq, C), jnp.bfloat16),       # context with heads folded back to lanes
            ],
        ),
        compiler_params=pltpu.CompilerParams(
            # Batch axis parallel (megacore / v7x two-TC sharding); query tiles run in order
            # within a batch element so the qi==0 K/V projection precedes its consumers.
            dimension_semantics=("parallel", "arbitrary"),
            vmem_limit_bytes=48 * 1024 * 1024,
        ),
    )(x, wq, wk, wv, wp, bp)


def attention_reference(x, w_qkv, w_proj, b_proj, *, num_heads, scale):
    """Pure-JAX f32 reference matching the PyTorch module."""
    B, N, C = x.shape
    hd = C // num_heads
    qkv = x @ w_qkv                                      # (B, N, 3C)
    qkv = qkv.reshape(B, N, 3, num_heads, hd).transpose(2, 0, 3, 1, 4)
    q, k, v = qkv[0], qkv[1], qkv[2]                     # (B, H, N, hd)
    attn = (q @ k.transpose(0, 1, 3, 2)) * scale
    attn = jax.nn.softmax(attn, axis=-1)
    out = (attn @ v).transpose(0, 2, 1, 3).reshape(B, N, C)
    return out @ w_proj + b_proj


def _make_params(key, C):
    """nn.Linear-style deterministic synthetic parameters, pre-transposed so math is x @ W + b."""
    kqkv, kproj, kb = jax.random.split(key, 3)
    bound = 1.0 / math.sqrt(C)
    w_qkv = jax.random.uniform(kqkv, (C, 3 * C), jnp.float32, -bound, bound)
    w_proj = jax.random.uniform(kproj, (C, C), jnp.float32, -bound, bound)
    b_proj = jax.random.uniform(kb, (C,), jnp.float32, -bound, bound)
    return w_qkv, w_proj, b_proj


if __name__ == "__main__":
    key = jax.random.PRNGKey(0)
    k1, k2, kp1, kp2 = jax.random.split(key, 4)

    # ---- Test 1: module-default-ish toy shape (dim=32, num_heads=8 -> head_dim=4) ----
    B, N, C, H = 2, 8, 32, 8
    scale = (C // H) ** (-0.5)                      # qk_scale=None -> head_dim**-0.5
    x = jax.random.normal(k1, (B, N, C), dtype=jnp.float32)
    w_qkv, w_proj, b_proj = _make_params(kp1, C)

    out = attention_forward(x, w_qkv, w_proj, b_proj, num_heads=H, scale=scale)
    out = jax.block_until_ready(out)
    ref = attention_reference(x, w_qkv, w_proj, b_proj, num_heads=H, scale=scale)
    assert out.shape == (B, N, C)
    # bf16 MXU operands + approx reciprocal -> loosened tolerance vs the f32 reference.
    assert jnp.allclose(out, ref, atol=2e-2, rtol=2e-2), "mismatch vs reference (test 1)"

    # ---- Test 2: exercises the query-tile grid axis (N=16 -> tq=8, nq=2) ----
    B2, N2, C2, H2 = 1, 16, 32, 4
    scale2 = (C2 // H2) ** (-0.5)
    x2 = jax.random.normal(k2, (B2, N2, C2), dtype=jnp.float32)
    w_qkv2, w_proj2, b_proj2 = _make_params(kp2, C2)

    out2 = attention_forward(x2, w_qkv2, w_proj2, b_proj2, num_heads=H2, scale=scale2)
    out2 = jax.block_until_ready(out2)
    ref2 = attention_reference(x2, w_qkv2, w_proj2, b_proj2, num_heads=H2, scale=scale2)
    assert out2.shape == (B2, N2, C2)
    assert jnp.allclose(out2, ref2, atol=2e-2, rtol=2e-2), "mismatch vs reference (test 2)"

    print("KERNEL_OK")
</pallas_src>

<mosaic_0001>
module attributes {stable_mosaic.version = 11 : i64} {
  func.func @_attention_kernel(%arg0: i32, %arg1: i32, %arg2: memref<1x8x32xf32, #tpu.memory_space<vmem>>, %arg3: memref<32x32xbf16, #tpu.memory_space<vmem>>, %arg4: memref<32x32xbf16, #tpu.memory_space<vmem>>, %arg5: memref<32x32xbf16, #tpu.memory_space<vmem>>, %arg6: memref<32x32xbf16, #tpu.memory_space<vmem>>, %arg7: memref<1x32xf32, #tpu.memory_space<vmem>>, %arg8: memref<1x8x32xf32, #tpu.memory_space<vmem>>, %arg9: memref<8x8x4xbf16, #tpu.memory_space<vmem>>, %arg10: memref<8x8x4xbf16, #tpu.memory_space<vmem>>, %arg11: memref<8x8x4xbf16, #tpu.memory_space<vmem>>, %arg12: memref<8x32xbf16, #tpu.memory_space<vmem>>) attributes {dimension_semantics = [#tpu.dimension_semantics<parallel>, #tpu.dimension_semantics<arbitrary>], iteration_bounds = array<i64: 2, 1>, scalar_prefetch = 0 : i64, scratch_operands = 4 : i64, tpu.core_type = #tpu.core_type<tc>, window_params = [{transform_indices = @transform_0, window_bounds = array<i64: 1, 8, 32>}, {pipeline_mode = #tpu.pipeline_mode<synchronous>, transform_indices = @transform_1, window_bounds = array<i64: 32, 32>}, {pipeline_mode = #tpu.pipeline_mode<synchronous>, transform_indices = @transform_2, window_bounds = array<i64: 32, 32>}, {pipeline_mode = #tpu.pipeline_mode<synchronous>, transform_indices = @transform_3, window_bounds = array<i64: 32, 32>}, {pipeline_mode = #tpu.pipeline_mode<synchronous>, transform_indices = @transform_4, window_bounds = array<i64: 32, 32>}, {pipeline_mode = #tpu.pipeline_mode<synchronous>, transform_indices = @transform_5, window_bounds = array<i64: 1, 32>}, {transform_indices = @transform_6, window_bounds = array<i64: 1, 8, 32>}]} {
    %c0_i32 = arith.constant 0 : i32
    %0 = arith.cmpi eq, %arg1, %c0_i32 : i32
    %1 = arith.extui %0 : i1 to i32
    %c0_i32_0 = arith.constant 0 : i32
    %2 = arith.cmpi ne, %1, %c0_i32_0 : i32
    scf.if %2 {
      %c0_54 = arith.constant 0 : index
      %c0_55 = arith.constant 0 : index
      %c0_56 = arith.constant 0 : index
      %94 = vector.load %arg2[%c0_54, %c0_55, %c0_56] : memref<1x8x32xf32, #tpu.memory_space<vmem>>, vector<1x8x32xf32>
      %95 = vector.shape_cast %94 : vector<1x8x32xf32> to vector<8x32xf32>
      %96 = arith.truncf %95 : vector<8x32xf32> to vector<8x32xbf16>
      %c0_57 = arith.constant 0 : index
      %c0_58 = arith.constant 0 : index
      %97 = vector.load %arg4[%c0_57, %c0_58] : memref<32x32xbf16, #tpu.memory_space<vmem>>, vector<32x32xbf16>
      %cst_59 = arith.constant dense<0.000000e+00> : vector<8x32xf32>
      %98 = tpu.matmul %96, %97, %cst_59 {dimension_numbers = #tpu.dot_dimension_numbers<[1], [0], [0], [1], [0, 0, 1, 1], [], []>} : vector<8x32xbf16>, vector<32x32xbf16>, vector<8x32xf32> -> vector<8x32xf32>
      %99 = arith.truncf %98 : vector<8x32xf32> to vector<8x32xbf16>
      %c0_60 = arith.constant 0 : index
      %c0_61 = arith.constant 0 : index
      %100 = vector.load %arg5[%c0_60, %c0_61] : memref<32x32xbf16, #tpu.memory_space<vmem>>, vector<32x32xbf16>
      %cst_62 = arith.constant dense<0.000000e+00> : vector<8x32xf32>
      %101 = tpu.matmul %96, %100, %cst_62 {dimension_numbers = #tpu.dot_dimension_numbers<[1], [0], [0], [1], [0, 0, 1, 1], [], []>} : vector<8x32xbf16>, vector<32x32xbf16>, vector<8x32xf32> -> vector<8x32xf32>
      %102 = arith.truncf %101 : vector<8x32xf32> to vector<8x32xbf16>
      %103 = vector.extract_strided_slice %99 {offsets = [0, 0], sizes = [8, 4], strides = [1, 1]} : vector<8x32xbf16> to vector<8x4xbf16>
      %c0_63 = arith.constant 0 : index
      %c0_64 = arith.constant 0 : index
      %c0_65 = arith.constant 0 : index
      %104 = vector.load %arg10[%c0_63, %c0_64, %c0_65] : memref<8x8x4xbf16, #tpu.memory_space<vmem>>, vector<1x8x4xbf16>
      %105 = vector.shape_cast %104 : vector<1x8x4xbf16> to vector<8x4xbf16>
      %106 = vector.shape_cast %103 : vector<8x4xbf16> to vector<1x8x4xbf16>
      tpu.vector_store %arg10[%c0_63, %c0_64, %c0_65], %106 {strides = array<i32>} : memref<8x8x4xbf16, #tpu.memory_space<vmem>>, vector<1x8x4xbf16>,
      %107 = vector.extract_strided_slice %102 {offsets = [0, 0], sizes = [8, 4], strides = [1, 1]} : vector<8x32xbf16> to vector<8x4xbf16>
      %c0_66 = arith.constant 0 : index
      %c0_67 = arith.constant 0 : index
      %c0_68 = arith.constant 0 : index
      %108 = vector.load %arg11[%c0_66, %c0_67, %c0_68] : memref<8x8x4xbf16, #tpu.memory_space<vmem>>, vector<1x8x4xbf16>
      %109 = vector.shape_cast %108 : vector<1x8x4xbf16> to vector<8x4xbf16>
      %110 = vector.shape_cast %107 : vector<8x4xbf16> to vector<1x8x4xbf16>
      tpu.vector_store %arg11[%c0_66, %c0_67, %c0_68], %110 {strides = array<i32>} : memref<8x8x4xbf16, #tpu.memory_space<vmem>>, vector<1x8x4xbf16>,
      %111 = vector.extract_strided_slice %99 {offsets = [0, 4], sizes = [8, 4], strides = [1, 1]} : vector<8x32xbf16> to vector<8x4xbf16>
      %c1_69 = arith.constant 1 : index
      %c0_70 = arith.constant 0 : index
      %c0_71 = arith.constant 0 : index
      %112 = vector.load %arg10[%c1_69, %c0_70, %c0_71] : memref<8x8x4xbf16, #tpu.memory_space<vmem>>, vector<1x8x4xbf16>
      %113 = vector.shape_cast %112 : vector<1x8x4xbf16> to vector<8x4xbf16>
      %114 = vector.shape_cast %111 : vector<8x4xbf16> to vector<1x8x4xbf16>
      tpu.vector_store %arg10[%c1_69, %c0_70, %c0_71], %114 {strides = array<i32>} : memref<8x8x4xbf16, #tpu.memory_space<vmem>>, vector<1x8x4xbf16>,
      %115 = vector.extract_strided_slice %102 {offsets = [0, 4], sizes = [8, 4], strides = [1, 1]} : vector<8x32xbf16> to vector<8x4xbf16>
      %c1_72 = arith.constant 1 : index
      %c0_73 = arith.constant 0 : index
      %c0_74 = arith.constant 0 : index
      %116 = vector.load %arg11[%c1_72, %c0_73, %c0_74] : memref<8x8x4xbf16, #tpu.memory_space<vmem>>, vector<1x8x4xbf16>
      %117 = vector.shape_cast %116 : vector<1x8x4xbf16> to vector<8x4xbf16>
      %118 = vector.shape_cast %115 : vector<8x4xbf16> to vector<1x8x4xbf16>
      tpu.vector_store %arg11[%c1_72, %c0_73, %c0_74], %118 {strides = array<i32>} : memref<8x8x4xbf16, #tpu.memory_space<vmem>>, vector<1x8x4xbf16>,
      %119 = vector.extract_strided_slice %99 {offsets = [0, 8], sizes = [8, 4], strides = [1, 1]} : vector<8x32xbf16> to vector<8x4xbf16>
      %c2_75 = arith.constant 2 : index
      %c0_76 = arith.constant 0 : index
      %c0_77 = arith.constant 0 : index
      %120 = vector.load %arg10[%c2_75, %c0_76, %c0_77] : memref<8x8x4xbf16, #tpu.memory_space<vmem>>, vector<1x8x4xbf16>
      %121 = vector.shape_cast %120 : vector<1x8x4xbf16> to vector<8x4xbf16>
      %122 = vector.shape_cast %119 : vector<8x4xbf16> to vector<1x8x4xbf16>
      tpu.vector_store %arg10[%c2_75, %c0_76, %c0_77], %122 {strides = array<i32>} : memref<8x8x4xbf16, #tpu.memory_space<vmem>>, vector<1x8x4xbf16>,
      %123 = vector.extract_strided_slice %102 {offsets = [0, 8], sizes = [8, 4], strides = [1, 1]} : vector<8x32xbf16> to vector<8x4xbf16>
      %c2_78 = arith.constant 2 : index
      %c0_79 = arith.constant 0 : index
      %c0_80 = arith.constant 0 : index
      %124 = vector.load %arg11[%c2_78, %c0_79, %c0_80] : memref<8x8x4xbf16, #tpu.memory_space<vmem>>, vector<1x8x4xbf16>
      %125 = vector.shape_cast %124 : vector<1x8x4xbf16> to vector<8x4xbf16>
      %126 = vector.shape_cast %123 : vector<8x4xbf16> to vector<1x8x4xbf16>
      tpu.vector_store %arg11[%c2_78, %c0_79, %c0_80], %126 {strides = array<i32>} : memref<8x8x4xbf16, #tpu.memory_space<vmem>>, vector<1x8x4xbf16>,
      %127 = vector.extract_strided_slice %99 {offsets = [0, 12], sizes = [8, 4], strides = [1, 1]} : vector<8x32xbf16> to vector<8x4xbf16>
      %c3_81 = arith.constant 3 : index
      %c0_82 = arith.constant 0 : index
      %c0_83 = arith.constant 0 : index
      %128 = vector.load %arg10[%c3_81, %c0_82, %c0_83] : memref<8x8x4xbf16, #tpu.memory_space<vmem>>, vector<1x8x4xbf16>
      %129 = vector.shape_cast %128 : vector<1x8x4xbf16> to vector<8x4xbf16>
      %130 = vector.shape_cast %127 : vector<8x4xbf16> to vector<1x8x4xbf16>
      tpu.vector_store %arg10[%c3_81, %c0_82, %c0_83], %130 {strides = array<i32>} : memref<8x8x4xbf16, #tpu.memory_space<vmem>>, vector<1x8x4xbf16>,
      %131 = vector.extract_strided_slice %102 {offsets = [0, 12], sizes = [8, 4], strides = [1, 1]} : vector<8x32xbf16> to vector<8x4xbf16>
      %c3_84 = arith.constant 3 : index
      %c0_85 = arith.constant 0 : index
      %c0_86 = arith.constant 0 : index
      %132 = vector.load %arg11[%c3_84, %c0_85, %c0_86] : memref<8x8x4xbf16, #tpu.memory_space<vmem>>, vector<1x8x4xbf16>
      %133 = vector.shape_cast %132 : vector<1x8x4xbf16> to vector<8x4xbf16>
      %134 = vector.shape_cast %131 : vector<8x4xbf16> to vector<1x8x4xbf16>
      tpu.vector_store %arg11[%c3_84, %c0_85, %c0_86], %134 {strides = array<i32>} : memref<8x8x4xbf16, #tpu.memory_space<vmem>>, vector<1x8x4xbf16>,
      %135 = vector.extract_strided_slice %99 {offsets = [0, 16], sizes = [8, 4], strides = [1, 1]} : vector<8x32xbf16> to vector<8x4xbf16>
      %c4_87 = arith.constant 4 : index
      %c0_88 = arith.constant 0 : index
      %c0_89 = arith.constant 0 : index
      %136 = vector.load %arg10[%c4_87, %c0_88, %c0_89] : memref<8x8x4xbf16, #tpu.memory_space<vmem>>, vector<1x8x4xbf16>
      %137 = vector.shape_cast %136 : vector<1x8x4xbf16> to vector<8x4xbf16>
      %138 = vector.shape_cast %135 : vector<8x4xbf16> to vector<1x8x4xbf16>
      tpu.vector_store %arg10[%c4_87, %c0_88, %c0_89], %138 {strides = array<i32>} : memref<8x8x4xbf16, #tpu.memory_space<vmem>>, vector<1x8x4xbf16>,
      %139 = vector.extract_strided_slice %102 {offsets = [0, 16], sizes = [8, 4], strides = [1, 1]} : vector<8x32xbf16> to vector<8x4xbf16>
      %c4_90 = arith.constant 4 : index
      %c0_91 = arith.constant 0 : index
      %c0_92 = arith.constant 0 : index
      %140 = vector.load %arg11[%c4_90, %c0_91, %c0_92] : memref<8x8x4xbf16, #tpu.memory_space<vmem>>, vector<1x8x4xbf16>
      %141 = vector.shape_cast %140 : vector<1x8x4xbf16> to vector<8x4xbf16>
      %142 = vector.shape_cast %139 : vector<8x4xbf16> to vector<1x8x4xbf16>
      tpu.vector_store %arg11[%c4_90, %c0_91, %c0_92], %142 {strides = array<i32>} : memref<8x8x4xbf16, #tpu.memory_space<vmem>>, vector<1x8x4xbf16>,
      %143 = vector.extract_strided_slice %99 {offsets = [0, 20], sizes = [8, 4], strides = [1, 1]} : vector<8x32xbf16> to vector<8x4xbf16>
      %c5_93 = arith.constant 5 : index
      %c0_94 = arith.constant 0 : index
      %c0_95 = arith.constant 0 : index
      %144 = vector.load %arg10[%c5_93, %c0_94, %c0_95] : memref<8x8x4xbf16, #tpu.memory_space<vmem>>, vector<1x8x4xbf16>
      %145 = vector.shape_cast %144 : vector<1x8x4xbf16> to vector<8x4xbf16>
      %146 = vector.shape_cast %143 : vector<8x4xbf16> to vector<1x8x4xbf16>
      tpu.vector_store %arg10[%c5_93, %c0_94, %c0_95], %146 {strides = array<i32>} : memref<8x8x4xbf16, #tpu.memory_space<vmem>>, vector<1x8x4xbf16>,
      %147 = vector.extract_strided_slice %102 {offsets = [0, 20], sizes = [8, 4], strides = [1, 1]} : vector<8x32xbf16> to vector<8x4xbf16>
      %c5_96 = arith.constant 5 : index
      %c0_97 = arith.constant 0 : index
      %c0_98 = arith.constant 0 : index
      %148 = vector.load %arg11[%c5_96, %c0_97, %c0_98] : memref<8x8x4xbf16, #tpu.memory_space<vmem>>, vector<1x8x4xbf16>
      %149 = vector.shape_cast %148 : vector<1x8x4xbf16> to vector<8x4xbf16>
      %150 = vector.shape_cast %147 : vector<8x4xbf16> to vector<1x8x4xbf16>
      tpu.vector_store %arg11[%c5_96, %c0_97, %c0_98], %150 {strides = array<i32>} : memref<8x8x4xbf16, #tpu.memory_space<vmem>>, vector<1x8x4xbf16>,
      %151 = vector.extract_strided_slice %99 {offsets = [0, 24], sizes = [8, 4], strides = [1, 1]} : vector<8x32xbf16> to vector<8x4xbf16>
      %c6_99 = arith.constant 6 : index
      %c0_100 = arith.constant 0 : index
      %c0_101 = arith.constant 0 : index
      %152 = vector.load %arg10[%c6_99, %c0_100, %c0_101] : memref<8x8x4xbf16, #tpu.memory_space<vmem>>, vector<1x8x4xbf16>
      %153 = vector.shape_cast %152 : vector<1x8x4xbf16> to vector<8x4xbf16>
      %154 = vector.shape_cast %151 : vector<8x4xbf16> to vector<1x8x4xbf16>
      tpu.vector_store %arg10[%c6_99, %c0_100, %c0_101], %154 {strides = array<i32>} : memref<8x8x4xbf16, #tpu.memory_space<vmem>>, vector<1x8x4xbf16>,
      %155 = vector.extract_strided_slice %102 {offsets = [0, 24], sizes = [8, 4], strides = [1, 1]} : vector<8x32xbf16> to vector<8x4xbf16>
      %c6_102 = arith.constant 6 : index
      %c0_103 = arith.constant 0 : index
      %c0_104 = arith.constant 0 : index
      %156 = vector.load %arg11[%c6_102, %c0_103, %c0_104] : memref<8x8x4xbf16, #tpu.memory_space<vmem>>, vector<1x8x4xbf16>
      %157 = vector.shape_cast %156 : vector<1x8x4xbf16> to vector<8x4xbf16>
      %158 = vector.shape_cast %155 : vector<8x4xbf16> to vector<1x8x4xbf16>
      tpu.vector_store %arg11[%c6_102, %c0_103, %c0_104], %158 {strides = array<i32>} : memref<8x8x4xbf16, #tpu.memory_space<vmem>>, vector<1x8x4xbf16>,
      %159 = vector.extract_strided_slice %99 {offsets = [0, 28], sizes = [8, 4], strides = [1, 1]} : vector<8x32xbf16> to vector<8x4xbf16>
      %c7_105 = arith.constant 7 : index
      %c0_106 = arith.constant 0 : index
      %c0_107 = arith.constant 0 : index
      %160 = vector.load %arg10[%c7_105, %c0_106, %c0_107] : memref<8x8x4xbf16, #tpu.memory_space<vmem>>, vector<1x8x4xbf16>
      %161 = vector.shape_cast %160 : vector<1x8x4xbf16> to vector<8x4xbf16>
      %162 = vector.shape_cast %159 : vector<8x4xbf16> to vector<1x8x4xbf16>
      tpu.vector_store %arg10[%c7_105, %c0_106, %c0_107], %162 {strides = array<i32>} : memref<8x8x4xbf16, #tpu.memory_space<vmem>>, vector<1x8x4xbf16>,
      %163 = vector.extract_strided_slice %102 {offsets = [0, 28], sizes = [8, 4], strides = [1, 1]} : vector<8x32xbf16> to vector<8x4xbf16>
      %c7_108 = arith.constant 7 : index
      %c0_109 = arith.constant 0 : index
      %c0_110 = arith.constant 0 : index
      %164 = vector.load %arg11[%c7_108, %c0_109, %c0_110] : memref<8x8x4xbf16, #tpu.memory_space<vmem>>, vector<1x8x4xbf16>
      %165 = vector.shape_cast %164 : vector<1x8x4xbf16> to vector<8x4xbf16>
      %166 = vector.shape_cast %163 : vector<8x4xbf16> to vector<1x8x4xbf16>
      tpu.vector_store %arg11[%c7_108, %c0_109, %c0_110], %166 {strides = array<i32>} : memref<8x8x4xbf16, #tpu.memory_space<vmem>>, vector<1x8x4xbf16>,
    } else {
    }
    %c8_i32 = arith.constant 8 : i32
    %3 = arith.muli %arg1, %c8_i32 : i32
    %4 = tpu.assume_multiple %3, 8 : i32
    %c0 = arith.constant 0 : index
    %5 = arith.index_cast %4 : i32 to index
    %c0_1 = arith.constant 0 : index
    %6 = vector.load %arg2[%c0, %5, %c0_1] : memref<1x8x32xf32, #tpu.memory_space<vmem>>, vector<1x8x32xf32>
    %7 = vector.shape_cast %6 : vector<1x8x32xf32> to vector<8x32xf32>
    %8 = arith.truncf %7 : vector<8x32xf32> to vector<8x32xbf16>
    %c0_2 = arith.constant 0 : index
    %c0_3 = arith.constant 0 : index
    %9 = vector.load %arg3[%c0_2, %c0_3] : memref<32x32xbf16, #tpu.memory_space<vmem>>, vector<32x32xbf16>
    %cst = arith.constant dense<0.000000e+00> : vector<8x32xf32>
    %10 = tpu.matmul %8, %9, %cst {dimension_numbers = #tpu.dot_dimension_numbers<[1], [0], [0], [1], [0, 0, 1, 1], [], []>} : vector<8x32xbf16>, vector<32x32xbf16>, vector<8x32xf32> -> vector<8x32xf32>
    %11 = arith.truncf %10 : vector<8x32xf32> to vector<8x32xbf16>
    %12 = vector.extract_strided_slice %11 {offsets = [0, 0], sizes = [8, 4], strides = [1, 1]} : vector<8x32xbf16> to vector<8x4xbf16>
    %c0_4 = arith.constant 0 : index
    %c0_5 = arith.constant 0 : index
    %c0_6 = arith.constant 0 : index
    %13 = vector.load %arg9[%c0_4, %c0_5, %c0_6] : memref<8x8x4xbf16, #tpu.memory_space<vmem>>, vector<1x8x4xbf16>
    %14 = vector.shape_cast %13 : vector<1x8x4xbf16> to vector<8x4xbf16>
    %15 = vector.shape_cast %12 : vector<8x4xbf16> to vector<1x8x4xbf16>
    tpu.vector_store %arg9[%c0_4, %c0_5, %c0_6], %15 {strides = array<i32>} : memref<8x8x4xbf16, #tpu.memory_space<vmem>>, vector<1x8x4xbf16>,
    %16 = vector.extract_strided_slice %11 {offsets = [0, 4], sizes = [8, 4], strides = [1, 1]} : vector<8x32xbf16> to vector<8x4xbf16>
    %c1 = arith.constant 1 : index
    %c0_7 = arith.constant 0 : index
    %c0_8 = arith.constant 0 : index
    %17 = vector.load %arg9[%c1, %c0_7, %c0_8] : memref<8x8x4xbf16, #tpu.memory_space<vmem>>, vector<1x8x4xbf16>
    %18 = vector.shape_cast %17 : vector<1x8x4xbf16> to vector<8x4xbf16>
    %19 = vector.shape_cast %16 : vector<8x4xbf16> to vector<1x8x4xbf16>
    tpu.vector_store %arg9[%c1, %c0_7, %c0_8], %19 {strides = array<i32>} : memref<8x8x4xbf16, #tpu.memory_space<vmem>>, vector<1x8x4xbf16>,
    %20 = vector.extract_strided_slice %11 {offsets = [0, 8], sizes = [8, 4], strides = [1, 1]} : vector<8x32xbf16> to vector<8x4xbf16>
    %c2 = arith.constant 2 : index
    %c0_9 = arith.constant 0 : index
    %c0_10 = arith.constant 0 : index
    %21 = vector.load %arg9[%c2, %c0_9, %c0_10] : memref<8x8x4xbf16, #tpu.memory_space<vmem>>, vector<1x8x4xbf16>
    %22 = vector.shape_cast %21 : vector<1x8x4xbf16> to vector<8x4xbf16>
    %23 = vector.shape_cast %20 : vector<8x4xbf16> to vector<1x8x4xbf16>
    tpu.vector_store %arg9[%c2, %c0_9, %c0_10], %23 {strides = array<i32>} : memref<8x8x4xbf16, #tpu.memory_space<vmem>>, vector<1x8x4xbf16>,
    %24 = vector.extract_strided_slice %11 {offsets = [0, 12], sizes = [8, 4], strides = [1, 1]} : vector<8x32xbf16> to vector<8x4xbf16>
    %c3 = arith.constant 3 : index
    %c0_11 = arith.constant 0 : index
    %c0_12 = arith.constant 0 : index
    %25 = vector.load %arg9[%c3, %c0_11, %c0_12] : memref<8x8x4xbf16, #tpu.memory_space<vmem>>, vector<1x8x4xbf16>
    %26 = vector.shape_cast %25 : vector<1x8x4xbf16> to vector<8x4xbf16>
    %27 = vector.shape_cast %24 : vector<8x4xbf16> to vector<1x8x4xbf16>
    tpu.vector_store %arg9[%c3, %c0_11, %c0_12], %27 {strides = array<i32>} : memref<8x8x4xbf16, #tpu.memory_space<vmem>>, vector<1x8x4xbf16>,
    %28 = vector.extract_strided_slice %11 {offsets = [0, 16], sizes = [8, 4], strides = [1, 1]} : vector<8x32xbf16> to vector<8x4xbf16>
    %c4 = arith.constant 4 : index
    %c0_13 = arith.constant 0 : index
    %c0_14 = arith.constant 0 : index
    %29 = vector.load %arg9[%c4, %c0_13, %c0_14] : memref<8x8x4xbf16, #tpu.memory_space<vmem>>, vector<1x8x4xbf16>
    %30 = vector.shape_cast %29 : vector<1x8x4xbf16> to vector<8x4xbf16>
    %31 = vector.shape_cast %28 : vector<8x4xbf16> to vector<1x8x4xbf16>
    tpu.vector_store %arg9[%c4, %c0_13, %c0_14], %31 {strides = array<i32>} : memref<8x8x4xbf16, #tpu.memory_space<vmem>>, vector<1x8x4xbf16>,
    %32 = vector.extract_strided_slice %11 {offsets = [0, 20], sizes = [8, 4], strides = [1, 1]} : vector<8x32xbf16> to vector<8x4xbf16>
    %c5 = arith.constant 5 : index
    %c0_15 = arith.constant 0 : index
    %c0_16 = arith.constant 0 : index
    %33 = vector.load %arg9[%c5, %c0_15, %c0_16] : memref<8x8x4xbf16, #tpu.memory_space<vmem>>, vector<1x8x4xbf16>
    %34 = vector.shape_cast %33 : vector<1x8x4xbf16> to vector<8x4xbf16>
    %35 = vector.shape_cast %32 : vector<8x4xbf16> to vector<1x8x4xbf16>
    tpu.vector_store %arg9[%c5, %c0_15, %c0_16], %35 {strides = array<i32>} : memref<8x8x4xbf16, #tpu.memory_space<vmem>>, vector<1x8x4xbf16>,
    %36 = vector.extract_strided_slice %11 {offsets = [0, 24], sizes = [8, 4], strides = [1, 1]} : vector<8x32xbf16> to vector<8x4xbf16>
    %c6 = arith.constant 6 : index
    %c0_17 = arith.constant 0 : index
    %c0_18 = arith.constant 0 : index
    %37 = vector.load %arg9[%c6, %c0_17, %c0_18] : memref<8x8x4xbf16, #tpu.memory_space<vmem>>, vector<1x8x4xbf16>
    %38 = vector.shape_cast %37 : vector<1x8x4xbf16> to vector<8x4xbf16>
    %39 = vector.shape_cast %36 : vector<8x4xbf16> to vector<1x8x4xbf16>
    tpu.vector_store %arg9[%c6, %c0_17, %c0_18], %39 {strides = array<i32>} : memref<8x8x4xbf16, #tpu.memory_space<vmem>>, vector<1x8x4xbf16>,
    %40 = vector.extract_strided_slice %11 {offsets = [0, 28], sizes = [8, 4], strides = [1, 1]} : vector<8x32xbf16> to vector<8x4xbf16>
    %c7 = arith.constant 7 : index
    %c0_19 = arith.constant 0 : index
    %c0_20 = arith.constant 0 : index
    %41 = vector.load %arg9[%c7, %c0_19, %c0_20] : memref<8x8x4xbf16, #tpu.memory_space<vmem>>, vector<1x8x4xbf16>
    %42 = vector.shape_cast %41 : vector<1x8x4xbf16> to vector<8x4xbf16>
    %43 = vector.shape_cast %40 : vector<8x4xbf16> to vector<1x8x4xbf16>
    tpu.vector_store %arg9[%c7, %c0_19, %c0_20], %43 {strides = array<i32>} : memref<8x8x4xbf16, #tpu.memory_space<vmem>>, vector<1x8x4xbf16>,
    %c0_21 = arith.constant 0 : index
    %c0_22 = arith.constant 0 : index
    %c0_23 = arith.constant 0 : index
    %44 = vector.load %arg9[%c0_21, %c0_22, %c0_23] : memref<8x8x4xbf16, #tpu.memory_space<vmem>>, vector<8x8x4xbf16>
    %c0_24 = arith.constant 0 : index
    %c0_25 = arith.constant 0 : index
    %c0_26 = arith.constant 0 : index
    %45 = vector.load %arg10[%c0_24, %c0_25, %c0_26] : memref<8x8x4xbf16, #tpu.memory_space<vmem>>, vector<8x8x4xbf16>
    "tpu.trace_start"() <{level = 10 : i32, message = "hqd,hkd->hqk"}> : () -> ()
    %cst_27 = arith.constant dense<0.000000e+00> : vector<8x8x8xf32>
    %46 = tpu.matmul %44, %45, %cst_27 {dimension_numbers = #tpu.dot_dimension_numbers<[2], [2], [1], [1], [0, 0, 0, 1, 1, 1], [0], [0]>} : vector<8x8x4xbf16>, vector<8x8x4xbf16>, vector<8x8x8xf32> -> vector<8x8x8xf32>
    "tpu.trace_stop"() : () -> ()
    %cst_28 = arith.constant dense<0xFF800000> : vector<8x8xf32>
    %47 = vector.multi_reduction <maximumf>, %46, %cst_28 [2] : vector<8x8x8xf32> to vector<8x8xf32>
    %48 = vector.shape_cast %47 : vector<8x8xf32> to vector<8x8x1xf32>
    %49 = vector.broadcast %48 : vector<8x8x1xf32> to vector<8x8x8xf32>
    %50 = arith.subf %46, %49 : vector<8x8x8xf32>
    %51 = math.exp %50 : vector<8x8x8xf32>
    %cst_29 = arith.constant dense<0.000000e+00> : vector<8x8xf32>
    %52 = vector.multi_reduction <add>, %51, %cst_29 [2] : vector<8x8x8xf32> to vector<8x8xf32>
    %53 = vector.shape_cast %52 : vector<8x8xf32> to vector<8x8x1xf32>
    %54 = arith.truncf %51 : vector<8x8x8xf32> to vector<8x8x8xbf16>
    %c0_30 = arith.constant 0 : index
    %c0_31 = arith.constant 0 : index
    %c0_32 = arith.constant 0 : index
    %55 = vector.load %arg11[%c0_30, %c0_31, %c0_32] : memref<8x8x4xbf16, #tpu.memory_space<vmem>>, vector<8x8x4xbf16>
    "tpu.trace_start"() <{level = 10 : i32, message = "hqk,hkd->hqd"}> : () -> ()
    %cst_33 = arith.constant dense<0.000000e+00> : vector<8x8x4xf32>
    %56 = tpu.matmul %54, %55, %cst_33 {dimension_numbers = #tpu.dot_dimension_numbers<[2], [1], [1], [2], [0, 0, 0, 1, 1, 2], [0], [0]>} : vector<8x8x8xbf16>, vector<8x8x4xbf16>, vector<8x8x4xf32> -> vector<8x8x4xf32>
    "tpu.trace_stop"() : () -> ()
    %57 = tpu.reciprocal %53 {approx = true} : vector<8x8x1xf32> -> vector<8x8x1xf32>
    %58 = vector.broadcast %57 : vector<8x8x1xf32> to vector<8x8x4xf32>
    %59 = arith.mulf %56, %58 : vector<8x8x4xf32>
    %60 = arith.truncf %59 : vector<8x8x4xf32> to vector<8x8x4xbf16>
    %61 = vector.extract_strided_slice %60 {offsets = [0, 0, 0], sizes = [1, 8, 4], strides = [1, 1, 1]} : vector<8x8x4xbf16> to vector<1x8x4xbf16>
    %62 = vector.shape_cast %61 : vector<1x8x4xbf16> to vector<8x4xbf16>
    %c0_34 = arith.constant 0 : index
    %c0_35 = arith.constant 0 : index
    %63 = vector.load %arg12[%c0_34, %c0_35] : memref<8x32xbf16, #tpu.memory_space<vmem>>, vector<8x4xbf16>
    tpu.vector_store %arg12[%c0_34, %c0_35], %62 {strides = array<i32>} : memref<8x32xbf16, #tpu.memory_space<vmem>>, vector<8x4xbf16>,
    %64 = vector.extract_strided_slice %60 {offsets = [1, 0, 0], sizes = [1, 8, 4], strides = [1, 1, 1]} : vector<8x8x4xbf16> to vector<1x8x4xbf16>
    %65 = vector.shape_cast %64 : vector<1x8x4xbf16> to vector<8x4xbf16>
    %c0_36 = arith.constant 0 : index
    %c4_37 = arith.constant 4 : index
    %66 = vector.load %arg12[%c0_36, %c4_37] : memref<8x32xbf16, #tpu.memory_space<vmem>>, vector<8x4xbf16>
    tpu.vector_store %arg12[%c0_36, %c4_37], %65 {strides = array<i32>} : memref<8x32xbf16, #tpu.memory_space<vmem>>, vector<8x4xbf16>,
    %67 = vector.extract_strided_slice %60 {offsets = [2, 0, 0], sizes = [1, 8, 4], strides = [1, 1, 1]} : vector<8x8x4xbf16> to vector<1x8x4xbf16>
    %68 = vector.shape_cast %67 : vector<1x8x4xbf16> to vector<8x4xbf16>
    %c0_38 = arith.constant 0 : index
    %c8 = arith.constant 8 : index
    %69 = vector.load %arg12[%c0_38, %c8] : memref<8x32xbf16, #tpu.memory_space<vmem>>, vector<8x4xbf16>
    tpu.vector_store %arg12[%c0_38, %c8], %68 {strides = array<i32>} : memref<8x32xbf16, #tpu.memory_space<vmem>>, vector<8x4xbf16>,
    %70 = vector.extract_strided_slice %60 {offsets = [3, 0, 0], sizes = [1, 8, 4], strides = [1, 1, 1]} : vector<8x8x4xbf16> to vector<1x8x4xbf16>
    %71 = vector.shape_cast %70 : vector<1x8x4xbf16> to vector<8x4xbf16>
    %c0_39 = arith.constant 0 : index
    %c12 = arith.constant 12 : index
    %72 = vector.load %arg12[%c0_39, %c12] : memref<8x32xbf16, #tpu.memory_space<vmem>>, vector<8x4xbf16>
    tpu.vector_store %arg12[%c0_39, %c12], %71 {strides = array<i32>} : memref<8x32xbf16, #tpu.memory_space<vmem>>, vector<8x4xbf16>,
    %73 = vector.extract_strided_slice %60 {offsets = [4, 0, 0], sizes = [1, 8, 4], strides = [1, 1, 1]} : vector<8x8x4xbf16> to vector<1x8x4xbf16>
    %74 = vector.shape_cast %73 : vector<1x8x4xbf16> to vector<8x4xbf16>
    %c0_40 = arith.constant 0 : index
    %c16 = arith.constant 16 : index
    %75 = vector.load %arg12[%c0_40, %c16] : memref<8x32xbf16, #tpu.memory_space<vmem>>, vector<8x4xbf16>
    tpu.vector_store %arg12[%c0_40, %c16], %74 {strides = array<i32>} : memref<8x32xbf16, #tpu.memory_space<vmem>>, vector<8x4xbf16>,
    %76 = vector.extract_strided_slice %60 {offsets = [5, 0, 0], sizes = [1, 8, 4], strides = [1, 1, 1]} : vector<8x8x4xbf16> to vector<1x8x4xbf16>
    %77 = vector.shape_cast %76 : vector<1x8x4xbf16> to vector<8x4xbf16>
    %c0_41 = arith.constant 0 : index
    %c20 = arith.constant 20 : index
    %78 = vector.load %arg12[%c0_41, %c20] : memref<8x32xbf16, #tpu.memory_space<vmem>>, vector<8x4xbf16>
    tpu.vector_store %arg12[%c0_41, %c20], %77 {strides = array<i32>} : memref<8x32xbf16, #tpu.memory_space<vmem>>, vector<8x4xbf16>,
    %79 = vector.extract_strided_slice %60 {offsets = [6, 0, 0], sizes = [1, 8, 4], strides = [1, 1, 1]} : vector<8x8x4xbf16> to vector<1x8x4xbf16>
    %80 = vector.shape_cast %79 : vector<1x8x4xbf16> to vector<8x4xbf16>
    %c0_42 = arith.constant 0 : index
    %c24 = arith.constant 24 : index
    %81 = vector.load %arg12[%c0_42, %c24] : memref<8x32xbf16, #tpu.memory_space<vmem>>, vector<8x4xbf16>
    tpu.vector_store %arg12[%c0_42, %c24], %80 {strides = array<i32>} : memref<8x32xbf16, #tpu.memory_space<vmem>>, vector<8x4xbf16>,
    %82 = vector.extract_strided_slice %60 {offsets = [7, 0, 0], sizes = [1, 8, 4], strides = [1, 1, 1]} : vector<8x8x4xbf16> to vector<1x8x4xbf16>
    %83 = vector.shape_cast %82 : vector<1x8x4xbf16> to vector<8x4xbf16>
    %c0_43 = arith.constant 0 : index
    %c28 = arith.constant 28 : index
    %84 = vector.load %arg12[%c0_43, %c28] : memref<8x32xbf16, #tpu.memory_space<vmem>>, vector<8x4xbf16>
    tpu.vector_store %arg12[%c0_43, %c28], %83 {strides = array<i32>} : memref<8x32xbf16, #tpu.memory_space<vmem>>, vector<8x4xbf16>,
    %c0_44 = arith.constant 0 : index
    %c0_45 = arith.constant 0 : index
    %85 = vector.load %arg12[%c0_44, %c0_45] : memref<8x32xbf16, #tpu.memory_space<vmem>>, vector<8x32xbf16>
    %c0_46 = arith.constant 0 : index
    %c0_47 = arith.constant 0 : index
    %86 = vector.load %arg6[%c0_46, %c0_47] : memref<32x32xbf16, #tpu.memory_space<vmem>>, vector<32x32xbf16>
    %cst_48 = arith.constant dense<0.000000e+00> : vector<8x32xf32>
    %87 = tpu.matmul %85, %86, %cst_48 {dimension_numbers = #tpu.dot_dimension_numbers<[1], [0], [0], [1], [0, 0, 1, 1], [], []>} : vector<8x32xbf16>, vector<32x32xbf16>, vector<8x32xf32> -> vector<8x32xf32>
    %c0_49 = arith.constant 0 : index
    %c0_50 = arith.constant 0 : index
    %88 = vector.load %arg7[%c0_49, %c0_50] : memref<1x32xf32, #tpu.memory_space<vmem>>, vector<1x32xf32>
    %89 = vector.broadcast %88 : vector<1x32xf32> to vector<8x32xf32>
    %90 = arith.addf %87, %89 : vector<8x32xf32>
    %c0_51 = arith.constant 0 : index
    %c0_52 = arith.constant 0 : index
    %c0_53 = arith.constant 0 : index
    %91 = vector.load %arg8[%c0_51, %c0_52, %c0_53] : memref<1x8x32xf32, #tpu.memory_space<vmem>>, vector<1x8x32xf32>
    %92 = vector.shape_cast %91 : vector<1x8x32xf32> to vector<8x32xf32>
    %93 = vector.shape_cast %90 : vector<8x32xf32> to vector<1x8x32xf32>
    tpu.vector_store %arg8[%c0_51, %c0_52, %c0_53], %93 {strides = array<i32>} : memref<1x8x32xf32, #tpu.memory_space<vmem>>, vector<1x8x32xf32>,
    return
  }
  func.func @transform_0(%arg0: i32, %arg1: i32) -> (i32, i32, i32) {
    %c0_i32 = arith.constant 0 : i32
    %c0_i32_0 = arith.constant 0 : i32
    %c0_i32_1 = arith.constant 0 : i32
    return %arg0, %c0_i32, %c0_i32_0 : i32, i32, i32
  }
  func.func @transform_1(%arg0: i32, %arg1: i32) -> (i32, i32) {
    %c0_i32 = arith.constant 0 : i32
    %c0_i32_0 = arith.constant 0 : i32
    %c0_i32_1 = arith.constant 0 : i32
    return %c0_i32, %c0_i32_0 : i32, i32
  }
  func.func @transform_2(%arg0: i32, %arg1: i32) -> (i32, i32) {
    %c0_i32 = arith.constant 0 : i32
    %c0_i32_0 = arith.constant 0 : i32
    %c0_i32_1 = arith.constant 0 : i32
    return %c0_i32, %c0_i32_0 : i32, i32
  }
  func.func @transform_3(%arg0: i32, %arg1: i32) -> (i32, i32) {
    %c0_i32 = arith.constant 0 : i32
    %c0_i32_0 = arith.constant 0 : i32
    %c0_i32_1 = arith.constant 0 : i32
    return %c0_i32, %c0_i32_0 : i32, i32
  }
  func.func @transform_4(%arg0: i32, %arg1: i32) -> (i32, i32) {
    %c0_i32 = arith.constant 0 : i32
    %c0_i32_0 = arith.constant 0 : i32
    %c0_i32_1 = arith.constant 0 : i32
    return %c0_i32, %c0_i32_0 : i32, i32
  }
  func.func @transform_5(%arg0: i32, %arg1: i32) -> (i32, i32) {
    %c0_i32 = arith.constant 0 : i32
    %c0_i32_0 = arith.constant 0 : i32
    %c0_i32_1 = arith.constant 0 : i32
    return %c0_i32, %c0_i32_0 : i32, i32
  }
  func.func @transform_6(%arg0: i32, %arg1: i32) -> (i32, i32, i32) {
    %c0_i32 = arith.constant 0 : i32
    %c0_i32_0 = arith.constant 0 : i32
    return %arg0, %arg1, %c0_i32 : i32, i32, i32
  }
}

</mosaic_0001>

<bundles_post_ra>
// kernel: tpu_custom_call.1
= control target key start
LH: loop header
LB: loop body
LE: loop exit
PB: predicated region body
PF: predicated region fallthrough
CT: control target
= control target key end

     0   :  { %s2974_s0 = inlined_call_operand.hbm [shape: f32[2,8,32], index: 0, kind: input, shape index: {}]   ;;  %s2975_s1 = inlined_call_operand.hbm [shape: bf16[32,32], index: 1, kind: input, shape index: {}]   ;;  %s2976_s2 = inlined_call_operand.hbm [shape: bf16[32,32], index: 2, kind: input, shape index: {}]   ;;  %s2977_s3 = inlined_call_operand.hbm [shape: bf16[32,32], index: 3, kind: input, shape index: {}]   ;;  %s2978_s4 = inlined_call_operand.hbm [shape: bf16[32,32], index: 4, kind: input, shape index: {}]   ;;  %s2979_s5 = inlined_call_operand.vmem [shape: f32[1,32], index: 5, kind: input, shape index: {}]   ;;  %s2980_s6 = inlined_call_operand.hbm [shape: f32[2,8,32], index: 6, kind: output, shape index: {}]  }
   0x1   :  { %2986 = sst [smem:[#allocation20_spill]] %s2975_s1 }
   0x2   :  { %11 = vsyncpa [#allocation7], 0 }
   0x3   :  { %13 = vsyncpa [#allocation7 + $0x1], 0 }
   0x4   :  { %14 = vsyncpa [#allocation10], 0 }
   0x5   :  { %15 = vsyncpa [#allocation13], 0 }
   0x6   :  { %16 = vsyncpa [#allocation8], 0 }
   0x7   :  { %18 = vsyncpa [#allocation8 + $0x1], 0  ;;  %s2470_s21 = smov 0   ;;  %s2472_s22 = smov 0  }
   0x8   :  { %s2474_s23 = smov 0   ;;  %s2476_s24 = smov 0  }
   0x9   :  { %s2478_s25 = smov 0   ;;  %s2480_s26 = smov 0  }
   0xa LB: > { %s2981_s27 = sadd.s32 4294967295, %s2409_s26   ;;  %p1776_p0 = scmp.ge.s32.totalorder %s2409_s26, 1  ;;  %s2409_s26 = sphi %s2480_s26, %s24_s26   ;;  %s2405_s25 = sphi %s2478_s25, %s3008_s25   ;;  %s2401_s24 = sphi %s2476_s24, %s3007_s24   ;;  %s2397_s23 = sphi %s2474_s23, %s3006_s23   ;;  %s2393_s22 = sphi %s2472_s22, %s3005_s22   ;;  %s2389_s21 = sphi %s2470_s21, %s3004_s21  }
   0xb   : > { %p2504_p1 = scmp.eq.s32.totalorder %s2981_s27, 0  ;;  %p200_p2 = scmp.lt.s32.totalorder %s2409_s26, 3 }
   0xc   : > { %s2411_s30 = smov [#allocation9]   ;;  %s2412_s9 = smov [#allocation12]  }
   0xd   : > { %s2987_s28 = scalar_select %p2504_p1, 1, 0 }
   0xe   : > { %p2509_p3 = pnand %p1776_p0, %p200_p2  ;;  %s212_s7 = sshll.u32 %s2411_s30, 4  ;;  %s2513_s7 = int_to_ptr.vmem [resolvable:$true] %s212_s7 }
   0xf   : > { %s238_s10 = sshll.u32 %s2412_s9, 4  ;;  %s2413_s11 = smov [#allocation11]   ;;  %s2524_s10 = int_to_ptr.vmem [resolvable:$true] %s238_s10 }
  0x10   : > { %s2988_s29 = scalar_select %p2509_p3, 1, 0 }
  0x11   : > { %p2036_p4 = pneg %p2509_p3  ;;  %s2526_s12 = sshll.u32 %s2413_s11, 4  ;;  %s226_s12 = int_to_ptr.vmem [resolvable:$true] %s2526_s12 }
  0x12   : > { %s2990_s1 = sld [smem:[#allocation20_spill]] }
  0x13   : > { %p2520_p6 = pnand %p2036_p4, %p2504_p1 }
  0x15   : > { %p2536_p8 = pneg %p2520_p6 }
  0x18   : > { %s2177_s15 = scalar_lea.hbm %s2990_s1, 256 }
  0x19   : > { %p2178_p7 = scmp.ne.s32.totalorder %s2990_s1, %s2177_s15  ;;  %p2184_p11 = scmp.lt.u32.totalorder %s2177_s15, %s2990_s1 }
  0x1b   : > { %p2180_p9 = pnand %p2536_p8, %p2178_p7 }
  0x1d   : > { %p2181_p10 = pneg %p2180_p9 }
  0x1f   : > { %p2186_p12 = pnand %p2184_p11, %p2181_p10 }
  0x21   : > { %2189 = shalt.err (!%p2186_p12)
}
  0x22   : > { %s2190_s30 = scalar_lea.vmem %s2513_s7, 256  ;;  %p2198_p4 = scmp.lt.s32.totalorder %s2513_s7, %s2513_s7 }
  0x23   : > { %p2191_p13 = scmp.ne.s32.totalorder %s2513_s7, %s2190_s30  ;;  %p2199_p5 = scmp.lt.s32.totalorder %s2190_s30, %s2190_s30 }
  0x25   : > { %p2193_p0 = pnand %p2191_p13, %p2536_p8  ;;  %p2200_p7 = por %p2199_p5, %p2198_p4 }
  0x27   : > { %p2194_p2 = pneg %p2193_p0 }
  0x29   : > { %p2201_p9 = pnand %p2200_p7, %p2194_p2 }
  0x2b   : > { %2204 = shalt.err (!%p2201_p9)
}
  0x2c   : > { %s2414_s9 = smov 64   ;;  %s2415_s11 = smov 4  }
  0x2d   : > { %2039 = dma.hbm_to_vmem [thread:$0]  (!%p2520_p6), %s2990_s1, 256, %s2513_s7, [#allocation10], %s2414_s9, %s2414_s9, %s2415_s11  }
  0x2e   : > { %s2205_s17 = scalar_lea.hbm %s2977_s3, 256 }
  0x2f   : > { %p2206_p5 = scmp.ne.s32.totalorder %s2977_s3, %s2205_s17  ;;  %p2212_p12 = scmp.lt.u32.totalorder %s2205_s17, %s2977_s3 }
  0x31   : > { %p2208_p10 = pnand %p2206_p5, %p2536_p8 }
  0x33   : > { %p2209_p11 = pneg %p2208_p10 }
  0x35   : > { %p2214_p13 = pnand %p2212_p12, %p2209_p11 }
  0x37   : > { %2217 = shalt.err (!%p2214_p13)
}
  0x38   : > { %s2218_s7 = scalar_lea.vmem %s2524_s10, 256  ;;  %p2226_p7 = scmp.lt.s32.totalorder %s2524_s10, %s2524_s10 }
  0x39   : > { %p2219_p0 = scmp.ne.s32.totalorder %s2524_s10, %s2218_s7  ;;  %p2227_p9 = scmp.lt.s32.totalorder %s2218_s7, %s2218_s7 }
  0x3b   : > { %p2221_p2 = pnand %p2219_p0, %p2536_p8  ;;  %p2228_p5 = por %p2227_p9, %p2226_p7 }
  0x3d   : > { %p2222_p4 = pneg %p2221_p2 }
  0x3f   : > { %p2229_p10 = pnand %p2228_p5, %p2222_p4 }
  0x41   : > { %2232 = shalt.err (!%p2229_p10)
}
  0x42   : > { %2045 = dma.hbm_to_vmem [thread:$0]  (!%p2520_p6), %s2977_s3, 256, %s2524_s10, [#allocation13], %s2414_s9, %s2414_s9, %s2415_s11  }
  0x43   : > { %s2233_s16 = scalar_lea.hbm %s2976_s2, 256 }
  0x44   : > { %p2234_p11 = scmp.ne.s32.totalorder %s2976_s2, %s2233_s16  ;;  %p2240_p0 = scmp.lt.u32.totalorder %s2233_s16, %s2976_s2 }
  0x46   : > { %p2236_p12 = pnand %p2234_p11, %p2536_p8 }
  0x48   : > { %p2237_p13 = pneg %p2236_p12 }
  0x4a   : > { %p2242_p2 = pnand %p2240_p0, %p2237_p13 }
  0x4c   : > { %2245 = shalt.err (!%p2242_p2)
}
  0x4d   : > { %s2246_s7 = scalar_lea.vmem %s226_s12, 256  ;;  %p2254_p5 = scmp.lt.s32.totalorder %s226_s12, %s226_s12 }
  0x4e   : > { %p2247_p4 = scmp.ne.s32.totalorder %s226_s12, %s2246_s7  ;;  %p2255_p10 = scmp.lt.s32.totalorder %s2246_s7, %s2246_s7 }
  0x50   : > { %p2249_p7 = pnand %p2247_p4, %p2536_p8  ;;  %p2256_p3 = por %p2255_p10, %p2254_p5 }
  0x52   : > { %p2250_p9 = pneg %p2249_p7 }
  0x54   : > { %p2257_p1 = pnand %p2256_p3, %p2250_p9 }
  0x56   : > { %2260 = shalt.err (!%p2257_p1)
}
  0x57   : > { %2042 = dma.hbm_to_vmem [thread:$0]  (!%p2520_p6), %s2976_s2, 256, %s226_s12, [#allocation10], %s2414_s9, %s2414_s9, %s2415_s11  }
  0x58   : > { %s2416_s13 = smov [#allocation14]   ;;  %s2261_s17 = scalar_lea.hbm %s2978_s4, 256 }
  0x59   : > { %s251_s14 = sshll.u32 %s2416_s13, 4  ;;  %p2262_p1 = scmp.ne.s32.totalorder %s2978_s4, %s2261_s17  ;;  %s252_s14 = int_to_ptr.vmem [resolvable:$true] %s251_s14 }
  0x5a   : > { %p2268_p12 = scmp.lt.u32.totalorder %s2261_s17, %s2978_s4 }
  0x5b   : > { %p2264_p3 = pnand %p2262_p1, %p2536_p8 }
  0x5d   : > { %p2265_p11 = pneg %p2264_p3 }
  0x5f   : > { %p2270_p13 = pnand %p2268_p12, %p2265_p11 }
  0x61   : > { %2273 = shalt.err (!%p2270_p13)
}
  0x62   : > { %s2274_s12 = scalar_lea.vmem %s252_s14, 256  ;;  %p2282_p7 = scmp.lt.s32.totalorder %s252_s14, %s252_s14 }
  0x63   : > { %p2275_p0 = scmp.ne.s32.totalorder %s252_s14, %s2274_s12  ;;  %p2283_p9 = scmp.lt.s32.totalorder %s2274_s12, %s2274_s12 }
  0x65   : > { %p2277_p2 = pnand %p2275_p0, %p2536_p8  ;;  %p2284_p5 = por %p2283_p9, %p2282_p7 }
  0x67   : > { %p2278_p4 = pneg %p2277_p2 }
  0x69   : > { %p2285_p10 = pnand %p2284_p5, %p2278_p4 }
  0x6b   : > { %2288 = shalt.err (!%p2285_p10)
}
  0x6c   : > { %2048 = dma.hbm_to_vmem [thread:$0]  (!%p2520_p6), %s2978_s4, 256, %s252_s14, [#allocation13], %s2414_s9, %s2414_s9, %s2415_s11  }
  0x6d   : > { %s1775_s8 = sadd.s32 4294967294, %s2409_s26   ;;  %s36_s18 = sadd.s32 1, %s2405_s25 }
  0x6e   : > { %p38_p8 = scmp.ge.s32.totalorder %s36_s18, 2  ;;  %s43_s13 = sadd.s32 1, %s2397_s23 }
  0x6f   : > { %p50_p1 = scmp.ne.s32.totalorder %s2397_s23, %s2393_s22  ;;  %p51_p3 = scmp.eq.s32.totalorder %s2409_s26, 0 }
  0x70   : > { %s3010_s18 = smov (%p38_p8, %s36_s18), 0  ;;  %p56_p12 = scmp.ne.s32.totalorder %s2393_s22, %s2389_s21 }
  0x71   : > { %p2637_p11 = por %p51_p3, %p50_p1  ;;  %s40_s9 = ssub.s32 %s2405_s25, %s3010_s18 }
  0x72   : > { %s2993_s11 = sadd.s32 4294967295, %s2409_s26   ;;  %p41_p13 = scmp.eq.s32.totalorder %s40_s9, 0 }
  0x73   : > { %p187_p6 = scmp.eq.s32.totalorder %s2993_s11, 1  ;;  %p2994_p0 = scmp.ne.s32.totalorder %s2987_s28, 0 }
  0x74   : > { %p193_p7 = scmp.eq.s32.totalorder %s1775_s8, 1  ;;  %p2061_p5 = scmp.lt.s32.totalorder %s2409_s26, 2 }
  0x75   : > { %p2649_p2 = por %p2994_p0, %p56_p12  ;;  %p2653_p4 = por %p187_p6, %p50_p1 }
  0x76   : > { %s2658_s17 = scalar_select %p41_p13, %s2397_s23, %s43_s13  }
  0x77   : > { %s2996_s16 = scalar_select %p2653_p4, 1, 0 }
  0x78   : > { %p2660_p9 = por %p193_p7, %p56_p12  ;;  %s268_s20 = sand.u32 1, %s2397_s23  }
  0x79   : > { %s1783_s30 = sshll.u32 %s2405_s25, 7  ;;  %s1782_s7 = sshll.u32 %s268_s20, 3 }
  0x7a   : > { %s2997_s19 = scalar_select %p2660_p9, 1, 0 }
  0x7b   : > { %s2670_s27 = scalar_lea.hbm %s2974_s0, %s1783_s30  ;;  %s272_s8 = scalar_lea.vmem [#allocation6], %s1782_s7 }
  0x7c   : > { %s279_s13 = sshll.u32 %s272_s8, 4  ;;  %p2674_p10 = pnand %p2061_p5, %p2637_p11  ;;  %s2678_s13 = int_to_ptr.vmem [resolvable:$true] %s279_s13 }
  0x7d   : > { %s269_s11 = scalar_lea.sflag [#allocation7], %s268_s20  ;;  %s2289_s1 = scalar_lea.hbm %s2670_s27, 128 }
  0x7e   : > { %p2290_p8 = scmp.ne.s32.totalorder %s2670_s27, %s2289_s1  ;;  %p2291_p1 = pneg %p2674_p10 }
  0x7f   : > { %s2294_s15 = scalar_lea.hbm %s2974_s0, 256  ;;  %p2295_p11 = scmp.lt.u32.totalorder %s2670_s27, %s2974_s0 }
  0x80   : > { %p2292_p3 = pnand %p2291_p1, %p2290_p8  ;;  %p2296_p6 = scmp.lt.u32.totalorder %s2294_s15, %s2289_s1 }
  0x81   : > { %p2298_p0 = scmp.lt.u32.totalorder %s2289_s1, %s2670_s27 }
  0x82   : > { %p2293_p12 = pneg %p2292_p3  ;;  %p2297_p13 = por %p2296_p6, %p2295_p11 }
  0x84   : > { %p2299_p7 = por %p2298_p0, %p2297_p13 }
  0x86   : > { %p2300_p5 = pnand %p2299_p7, %p2293_p12 }
  0x88   : > { %2303 = shalt.err (!%p2300_p5)
}
  0x89   : > { %s2304_s20 = scalar_lea.vmem %s2678_s13, 128  ;;  %s2417_s8 = smov [#allocation6]  }
  0x8a   : > { %p2305_p8 = scmp.ne.s32.totalorder %s2678_s13, %s2304_s20  ;;  %s2309_s30 = sshll.u32 %s2417_s8, 4  ;;  %s2310_s30 = int_to_ptr.vmem [resolvable:$false] %s2309_s30 }
  0x8b   : > { %s2311_s7 = scalar_lea.vmem %s2310_s30, 256  ;;  %p2312_p4 = scmp.lt.s32.totalorder %s2678_s13, %s2310_s30 }
  0x8c   : > { %p2307_p3 = pnand %p2305_p8, %p2291_p1  ;;  %p2313_p11 = scmp.lt.s32.totalorder %s2311_s7, %s2304_s20 }
  0x8e   : > { %p2308_p9 = pneg %p2307_p3  ;;  %p2314_p6 = por %p2313_p11, %p2312_p4 }
  0x90   : > { %p2315_p13 = pnand %p2314_p6, %p2308_p9 }
  0x92   : > { %2318 = shalt.err (!%p2315_p13)
}
  0x93   : > { %2052 = dma.hbm_to_vmem [thread:$0]  (!%p2674_p10), %s2670_s27, 128, %s2678_s13, %s269_s11  }
  0x94   : > { %p2999_p12 = scmp.ne.s32.totalorder %s2988_s29, 0 }
  0x95   : > { %s2708_s1 = sand.u32 (!%p2999_p12), 1, %s2393_s22  }
  0x96   : > { %288 = sbr.rel (%p2999_p12) target bundleno = 1519 (0x5ef), region = 44  ;;  %s1785_s15 = sshll.u32 (!%p2999_p12), %s2708_s1, 3 }
  0x97   : > { %s291_s12 = scalar_lea.sflag (!%p2999_p12), [#allocation7], %s2708_s1  ;;  %s294_s10 = scalar_lea.vmem (!%p2999_p12), [#allocation6], %s1785_s15 }
  0x9d   : > { %2372 = dma.done.wait (%p2649_p2), %s291_s12, 128  }
  0x9e   : > { %2374 = vsyncadd (%p2649_p2), %s291_s12, 4294967168  ;;  %p3000_p4 = scmp.ne.s32.totalorder %s2987_s28, 0 }
  0xa0   : > { %2376 = dma.done.wait (%p3000_p4), [#allocation10], 512  }
  0xa1   : > { %2378 = vsyncadd (%p3000_p4), [#allocation10], 4294966784 }
  0xa2   : > { %2380 = dma.done.wait (%p3000_p4), [#allocation13], 512  }
  0xa3   : > { %2382 = vsyncadd (%p3000_p4), [#allocation13], 4294966784  ;;  %v2418_v0 = vmov 0.0   ;;  %vm2419_vm0 = vmmov 0   ;;  %v2137_v1 = vld [vmem:[#allocation11] sm:$0xff]   ;;  %v2138_v2 = vld [vmem:[#allocation11 + $0x8] sm:$0xff]  }
  0xa4   : > { %1888 = vmatprep.subr.bf16.mxu0 %v2418_v0  ;;  %1892 = vmatprep.mubr.msk.bf16.mxu0 %vm2419_vm0, %v2418_v0  ;;  %v344_v3 = vld [vmem:[%s294_s10] sm:$0xff]  ;;  %v2141_v5 = vld [vmem:[#allocation12] sm:$0xff]   ;;  %vm362_vm1 = vcmask 261120   ;;  %v2142_v7 = vld [vmem:[#allocation12 + $0x8] sm:$0xff]   ;;  %vm464_vm2 = vcmask 27648   ;;  %s2420_s28 = smov 116  }
  0xa5   : > { %1896 = vmatprep.subr.bf16.mxu1 %v2418_v0  ;;  %1900 = vmatprep.mubr.msk.bf16.mxu1 %vm2419_vm0, %v2418_v0  ;;  %v345_v4 = vpack.c.bf16 %v344_v3, %v344_v3  ;;  %v2139_v6 = vld [vmem:[#allocation9] sm:$0xff]   ;;  %v2140_v8 = vld [vmem:[#allocation9 + $0x8] sm:$0xff]   ;;  %s2421_s29 = smov 124   ;;  %s2422_s14 = smov 120   ;;  %vm664_vm3 = vcmask 31744   ;;  %vm1125_vm4 = vcmask 1043456  }
  0xa6   : > { %1889 = vmatpush3.bf16.msra.mxu0 %v2137_v1  ;;  %1897 = vmatpush3.bf16.msra.mxu1 %v2141_v5  ;;  %s2423_s27 = smov 112   ;;  %s2424_s13 = smov 108   ;;  %vm1033_vm5 = vcmask 64512   ;;  %vm1522_vm6 = vcmask 60448   ;;  %vm1530_vm7 = vcmask 93248   ;;  %vm1538_vm8 = vcmask 126048  }
  0xa7   : > { %1890 = vmatprep.subr.bf16.mxu0 %v2418_v0  ;;  %1898 = vmatprep.subr.bf16.mxu1 %v2418_v0  ;;  %s2425_s9 = smov 104   ;;  %s2426_s11 = smov 100   ;;  %vm1546_vm9 = vcmask 158848   ;;  %vm1554_vm10 = vcmask 191648   ;;  %vm1562_vm11 = vcmask 224448   ;;  %vm1570_vm12 = vcmask 257248  }
  0xa8   : > { %s2427_s20 = smov 4   ;;  %s2428_s8 = smov 8  }
  0xa9   : > { %s2429_s30 = smov 12   ;;  %s2430_s7 = smov 20  }
  0xaa   : > { %1891 = vmatpush3.bf16.msra.mxu0 %v2138_v2  ;;  %1899 = vmatpush3.bf16.msra.mxu1 %v2142_v7  ;;  %s2431_s12 = smov 28   ;;  %s2432_s10 = smov 16  }
  0xab   : > { %1904 = vmatprep.subr.bf16.mxu0 %v2418_v0  ;;  %1912 = vmatprep.subr.bf16.mxu1 %v2418_v0  ;;  %p3001_p9 = scmp.ne.s32.totalorder %s2996_s16, 0 }
  0xad   : > { %1893 = vmatmul.mubr.msk.bf16.vlgmr.msra.gmra.mrb[0].mxu0 %vm362_vm1, %v345_v4  ;;  %1901 = vmatmul.mubr.msk.bf16.vlgmr.msra.gmra.mrb[0].mxu1 %vm362_vm1, %v345_v4 }
  0xae   : > { %1905 = vmatpush3.bf16.msra.mxu0 %v2139_v6  ;;  %1908 = vmatprep.mubr.msk.bf16.mxu0 %vm2419_vm0, %v2418_v0 }
  0xaf   : > { %1906 = vmatprep.subr.bf16.mxu0 %v2418_v0  ;;  %1914 = vmatprep.mubr.msk.bf16.mxu1 %vm2419_vm0, %v2418_v0 }
  0xb2   : > { %1907 = vmatpush3.bf16.msra.mxu0 %v2140_v8 }
  0xb3   : > { %1918 = vmatprep.subr.bf16.mxu0 %v2418_v0 }
  0xb5   : > { %1909 = vmatmul.mubr.msk.bf16.vlgmr.msra.gmra.mrb[4].mxu0 %vm362_vm1, %v345_v4 }
  0xb6   : > { %1920 = vmatprep.mubr.msk.bf16.mxu0 %vm2419_vm0, %v2418_v0 }
 0x180   : > { %v400_v9 = vpop.f32.mrb[0].mxu0  ;;  %v457_v22 = vpop.f32.mrb[0].mxu1 }
 0x181   : > { %v406_v10 = vpack.c.bf16 %v400_v9, %v400_v9  ;;  %v1894_v11 = vpop.f32.mrb[1].mxu0  ;;  %v2768_v23 = vpack.c.bf16 %v457_v22, %v457_v22  ;;  %v1902_v24 = vpop.f32.mrb[1].mxu1 }
 0x182   : > { %v403_v12 = vpop.f32.mrb[2].mxu0  ;;  %v460_v25 = vpop.f32.mrb[2].mxu1 }
 0x183   : > { %465 = vst.msk [vmem:[#allocation3] sm:$0xf] %vm464_vm2, %v406_v10  ;;  %493 = vrot.lane.b32.xlu1 %v406_v10, %s2420_s28  ;;  %470 = vrot.lane.b32.xlu0 %v406_v10, %s2421_s29  ;;  %v1895_v13 = vpop.f32.mrb[3].mxu0  ;;  %466 = vst.msk [vmem:[#allocation4] sm:$0xf] %vm464_vm2, %v2768_v23  ;;  %v1903_v26 = vpop.f32.mrb[3].mxu1 }
 0x187   : > { %483 = vrot.lane.b32.xlu0 %v406_v10, %s2422_s14 }
 0x188   : > { %v601_v14 = vpop.f32.mrb[4].mxu0 }
 0x189   : > { %v607_v15 = vpack.c.bf16 %v601_v14, %v601_v14  ;;  %v1910_v16 = vpop.f32.mrb[5].mxu0 }
 0x18a   : > { %v604_v17 = vpop.f32.mrb[6].mxu0  ;;  %v656_v18 = vld [vmem:[#allocation3] sm:$0xf] }
 0x18b   : > { %609 = vst.msk [vmem:[#allocation2] sm:$0xf] %vm464_vm2, %v607_v15  ;;  %503 = vrot.lane.b32.xlu0 %v406_v10, %s2423_s27  ;;  %613 = vrot.lane.b32.xlu1 %v607_v15, %s2421_s29  ;;  %v1911_v19 = vpop.f32.mrb[7].mxu0  ;;  %v669_v20 = vsel %vm664_vm3, %v656_v18, 0  ;;  %v1114_v59 = vld [vmem:[#allocation4] sm:$0xf] }
 0x18c   : > { %1913 = vmatpush3.bf16.xpose.msra.mxu1 %v669_v20  ;;  %v1127_v61 = vsel %vm1125_vm4, %v1114_v59, 0 }
 0x18d   : > { %1924 = vmatprep.subr.bf16.mxu1 %v2418_v0 }
 0x18f   : > { %513 = vrot.lane.b32.xlu0 %v406_v10, %s2424_s13  ;;  %618 = vrot.lane.b32.xlu1 %v607_v15, %s2422_s14 }
 0x192   : > { %v648_v21 = vld [vmem:[#allocation2] sm:$0xf] }
 0x193   : > { %523 = vrot.lane.b32.xlu0 %v406_v10, %s2425_s9  ;;  %623 = vrot.lane.b32.xlu1 %v607_v15, %s2420_s28 }
 0x194   : > { %1915 = vmatmul.mubr.msk.bf16.vlgmr.msra.gmra.mrb[4].mxu1 %vm664_vm3, %v648_v21 }
 0x195   : > { %1926 = vmatprep.mubr.msk.bf16.mxu1 %vm2419_vm0, %v2418_v0 }
 0x197   : > { %533 = vrot.lane.b32.xlu0 %v406_v10, %s2426_s11  ;;  %628 = vrot.lane.b32.xlu1 %v607_v15, %s2423_s27 }
 0x19b   : > { %638 = vrot.lane.b32.xlu0 %v607_v15, %s2425_s9  ;;  %633 = vrot.lane.b32.xlu1 %v607_v15, %s2424_s13 }
 0x19f   : > { %643 = vrot.lane.b32.xlu1 %v607_v15, %s2426_s11  ;;  %488 = vrot.lane.b32.xlu0 %v2768_v23, %s2422_s14 }
 0x1a3   : > { %478 = vrot.lane.b32.xlu1 %v2768_v23, %s2421_s29 }
 0x1a7   : > { %498 = vrot.lane.b32.xlu1 %v2768_v23, %s2420_s28  ;;  %s2433_s28 = smov 24  }
 0x1ab   : > { %508 = vrot.lane.b32.xlu1 %v2768_v23, %s2423_s27  ;;  %s1831_s27 = sshll.u32 %s2401_s24, 7  ;;  %s1641_s24 = scalar_lea.sflag [#allocation8], %s2708_s1 }
 0x1f5   : > { %v494_v27 = vpop.permute.xlu1 %493  ;;  %v471_v28 = vpop.permute.xlu0 %470 }
 0x1f6   : > { %497 = vst.msk [vmem:[#allocation3 + $0xc] sm:$0xf] %vm464_vm2, %v494_v27  ;;  %474 = vst.msk [vmem:[#allocation3 + $0x4] sm:$0xf] %vm464_vm2, %v471_v28 }
 0x1f9   : > { %v484_v29 = vpop.permute.xlu0 %483 }
 0x1fa   : > { %487 = vst.msk [vmem:[#allocation3 + $0x8] sm:$0xf] %vm464_vm2, %v484_v29 }
 0x1fd   : > { %v504_v30 = vpop.permute.xlu0 %503  ;;  %v614_v31 = vpop.permute.xlu1 %613  ;;  %v657_v32 = vld [vmem:[#allocation3 + $0x4] sm:$0xf]  ;;  %v659_v38 = vld [vmem:[#allocation3 + $0xc] sm:$0xf] }
 0x1fe   : > { %507 = vst.msk [vmem:[#allocation3 + $0x10] sm:$0xf] %vm464_vm2, %v504_v30  ;;  %617 = vst.msk [vmem:[#allocation2 + $0x4] sm:$0xf] %vm464_vm2, %v614_v31  ;;  %v715_v33 = vsel %vm664_vm3, %v657_v32, 0  ;;  %v807_v42 = vsel %vm664_vm3, %v659_v38, 0 }
 0x1ff   : > { %1919 = vmatpush3.bf16.xpose.msra.mxu0 %v715_v33 }
 0x200   : > { %1930 = vmatprep.subr.bf16.mxu0 %v2418_v0 }
 0x201   : > { %v514_v34 = vpop.permute.xlu0 %513  ;;  %v619_v35 = vpop.permute.xlu1 %618  ;;  %v658_v36 = vld [vmem:[#allocation3 + $0x8] sm:$0xf] }
 0x202   : > { %517 = vst.msk [vmem:[#allocation3 + $0x14] sm:$0xf] %vm464_vm2, %v514_v34  ;;  %622 = vst.msk [vmem:[#allocation2 + $0x8] sm:$0xf] %vm464_vm2, %v619_v35  ;;  %v761_v37 = vsel %vm664_vm3, %v658_v36, 0 }
 0x203   : > { %1925 = vmatpush3.bf16.xpose.msra.mxu1 %v761_v37 }
 0x204   : > { %1936 = vmatprep.subr.bf16.mxu1 %v2418_v0 }
 0x205   : > { %v524_v39 = vpop.permute.xlu0 %523  ;;  %v624_v40 = vpop.permute.xlu1 %623  ;;  %v649_v41 = vld [vmem:[#allocation2 + $0x4] sm:$0xf]  ;;  %v660_v43 = vld [vmem:[#allocation3 + $0x10] sm:$0xf] }
 0x206   : > { %527 = vst.msk [vmem:[#allocation3 + $0x18] sm:$0xf] %vm464_vm2, %v524_v39  ;;  %627 = vst.msk [vmem:[#allocation2 + $0xc] sm:$0xf] %vm464_vm2, %v624_v40  ;;  %1921 = vmatmul.mubr.msk.bf16.vlgmr.msra.gmra.mrb[8].mxu0 %vm664_vm3, %v649_v41  ;;  %v853_v47 = vsel %vm664_vm3, %v660_v43, 0 }
 0x207   : > { %1931 = vmatpush3.bf16.xpose.msra.mxu0 %v807_v42  ;;  %1932 = vmatprep.mubr.msk.bf16.mxu0 %vm2419_vm0, %v2418_v0 }
 0x208   : > { %1942 = vmatprep.subr.bf16.mxu0 %v2418_v0 }
 0x209   : > { %v534_v44 = vpop.permute.xlu0 %533  ;;  %v629_v45 = vpop.permute.xlu1 %628  ;;  %v650_v46 = vld [vmem:[#allocation2 + $0x8] sm:$0xf]  ;;  %v661_v48 = vld [vmem:[#allocation3 + $0x14] sm:$0xf] }
 0x20a   : > { %537 = vst.msk [vmem:[#allocation3 + $0x1c] sm:$0xf] %vm464_vm2, %v534_v44  ;;  %632 = vst.msk [vmem:[#allocation2 + $0x10] sm:$0xf] %vm464_vm2, %v629_v45  ;;  %1927 = vmatmul.mubr.msk.bf16.vlgmr.msra.gmra.mrb[8].mxu1 %vm664_vm3, %v650_v46  ;;  %v899_v52 = vsel %vm664_vm3, %v661_v48, 0 }
 0x20b   : > { %1937 = vmatpush3.bf16.xpose.msra.mxu1 %v853_v47  ;;  %1938 = vmatprep.mubr.msk.bf16.mxu1 %vm2419_vm0, %v2418_v0 }
 0x20c   : > { %1948 = vmatprep.subr.bf16.mxu1 %v2418_v0 }
 0x20d   : > { %v639_v49 = vpop.permute.xlu0 %638  ;;  %v634_v50 = vpop.permute.xlu1 %633  ;;  %v651_v51 = vld [vmem:[#allocation2 + $0xc] sm:$0xf]  ;;  %v662_v53 = vld [vmem:[#allocation3 + $0x18] sm:$0xf] }
 0x20e   : > { %642 = vst.msk [vmem:[#allocation2 + $0x18] sm:$0xf] %vm464_vm2, %v639_v49  ;;  %637 = vst.msk [vmem:[#allocation2 + $0x14] sm:$0xf] %vm464_vm2, %v634_v50  ;;  %1933 = vmatmul.mubr.msk.bf16.vlgmr.msra.gmra.mrb[12].mxu0 %vm664_vm3, %v651_v51  ;;  %v945_v56 = vsel %vm664_vm3, %v662_v53, 0 }
 0x20f   : > { %1943 = vmatpush3.bf16.xpose.msra.mxu0 %v899_v52  ;;  %1944 = vmatprep.mubr.msk.bf16.mxu0 %vm2419_vm0, %v2418_v0 }
 0x210   : > { %1954 = vmatprep.subr.bf16.mxu0 %v2418_v0 }
 0x211   : > { %v644_v54 = vpop.permute.xlu1 %643  ;;  %v652_v55 = vld [vmem:[#allocation2 + $0x10] sm:$0xf]  ;;  %v663_v57 = vld [vmem:[#allocation3 + $0x1c] sm:$0xf]  ;;  %v489_v6 = vpop.permute.xlu0 %488 }
 0x212   : > { %647 = vst.msk [vmem:[#allocation2 + $0x1c] sm:$0xf] %vm464_vm2, %v644_v54  ;;  %1939 = vmatmul.mubr.msk.bf16.vlgmr.msra.gmra.mrb[12].mxu1 %vm664_vm3, %v652_v55  ;;  %v991_v60 = vsel %vm664_vm3, %v663_v57, 0  ;;  %492 = vst.msk [vmem:[#allocation4 + $0x8] sm:$0xf] %vm464_vm2, %v489_v6 }
 0x213   : > { %1949 = vmatpush3.bf16.xpose.msra.mxu1 %v945_v56  ;;  %1950 = vmatprep.mubr.msk.bf16.mxu1 %vm2419_vm0, %v2418_v0 }
 0x214   : > { %1960 = vmatprep.subr.bf16.mxu1 %v2418_v0 }
 0x215   : > { %v653_v58 = vld [vmem:[#allocation2 + $0x14] sm:$0xf]  ;;  %v654_v62 = vld [vmem:[#allocation2 + $0x18] sm:$0xf]  ;;  %v479_v7 = vpop.permute.xlu1 %478 }
 0x216   : > { %1945 = vmatmul.mubr.msk.bf16.vlgmr.msra.gmra.mrb[16].mxu0 %vm664_vm3, %v653_v58  ;;  %482 = vst.msk [vmem:[#allocation4 + $0x4] sm:$0xf] %vm464_vm2, %v479_v7 }
 0x217   : > { %1955 = vmatpush3.bf16.xpose.msra.mxu0 %v991_v60  ;;  %1956 = vmatprep.mubr.msk.bf16.mxu0 %vm2419_vm0, %v2418_v0 }
 0x218   : > { %1966 = vmatprep.subr.bf16.mxu0 %v2418_v0 }
 0x219   : > { %v655_v63 = vld [vmem:[#allocation2 + $0x1c] sm:$0xf]  ;;  %v499_v8 = vpop.permute.xlu1 %498  ;;  %v1116_v50 = vld [vmem:[#allocation4 + $0x8] sm:$0xf] }
 0x21a   : > { %1951 = vmatmul.mubr.msk.bf16.vlgmr.msra.gmra.mrb[16].mxu1 %vm664_vm3, %v654_v62  ;;  %502 = vst.msk [vmem:[#allocation4 + $0xc] sm:$0xf] %vm464_vm2, %v499_v8  ;;  %v1219_v53 = vsel %vm1125_vm4, %v1116_v50, 0 }
 0x21b   : > { %1961 = vmatpush3.bf16.msra.mxu1 %v1127_v61  ;;  %1962 = vmatprep.mubr.msk.bf16.mxu1 %vm2419_vm0, %v2418_v0 }
 0x21c   : > { %1972 = vmatprep.subr.bf16.mxu1 %v2418_v0 }
 0x21d   : > { %v509_v9 = vpop.permute.xlu1 %508  ;;  %v1115_v10 = vld [vmem:[#allocation4 + $0x4] sm:$0xf] }
 0x21e   : > { %1957 = vmatmul.mubr.msk.bf16.vlgmr.msra.gmra.mrb[20].mxu0 %vm664_vm3, %v655_v63  ;;  %512 = vst.msk [vmem:[#allocation4 + $0x10] sm:$0xf] %vm464_vm2, %v509_v9  ;;  %v1173_v11 = vsel %vm1125_vm4, %v1115_v10, 0 }
 0x21f   : > { %1968 = vmatprep.mubr.msk.bf16.mxu0 %vm2419_vm0, %v2418_v0  ;;  %1967 = vmatpush3.bf16.msra.mxu0 %v1173_v11 }
 0x220   : > { %1978 = vmatprep.subr.bf16.mxu0 %v2418_v0 }
 0x225   : > { %v1118_v10 = vld [vmem:[#allocation4 + $0x10] sm:$0xf] }
 0x267   : > { %v705_v1 = vpop.f32.mrb[4].mxu1 }
 0x268   : > { %v1916_v2 = vpop.f32.mrb[5].mxu1  ;;  %v1034_v3 = vsel %vm1033_vm5, %v705_v1, -inf }
 0x269   : > { %1035 = vmax.xlane.f32.xlu0 %v1034_v3  ;;  %v708_v4 = vpop.f32.mrb[6].mxu1  ;;  %v1117_v3 = vld [vmem:[#allocation4 + $0xc] sm:$0xf] }
 0x26a   : > { %v1917_v5 = vpop.f32.mrb[7].mxu1  ;;  %v1265_v7 = vsel %vm1125_vm4, %v1117_v3, 0 }
 0x2d9   : > { %v751_v12 = vpop.f32.mrb[8].mxu0 }
 0x2da   : > { %v1922_v13 = vpop.f32.mrb[9].mxu0  ;;  %v1037_v14 = vsel %vm1033_vm5, %v751_v12, -inf }
 0x2db   : > { %1038 = vmax.xlane.f32.xlu1 %v1037_v14  ;;  %v754_v15 = vpop.f32.mrb[10].mxu0  ;;  %v1311_v14 = vsel %vm1125_vm4, %v1118_v10, 0 }
 0x2dc   : > { %v1923_v16 = vpop.f32.mrb[11].mxu0 }
 0x2dd   : > { %v797_v17 = vpop.f32.mrb[8].mxu1 }
 0x2de   : > { %v1928_v18 = vpop.f32.mrb[9].mxu1  ;;  %v1040_v19 = vsel %vm1033_vm5, %v797_v17, -inf }
 0x2df   : > { %1041 = vmax.xlane.f32.xlu0 %v1040_v19  ;;  %v800_v20 = vpop.f32.mrb[10].mxu1 }
 0x2e0   : > { %v1929_v21 = vpop.f32.mrb[11].mxu1 }
 0x2e1   : > { %v843_v22 = vpop.f32.mrb[12].mxu0 }
 0x2e2   : > { %v1934_v24 = vpop.f32.mrb[13].mxu0  ;;  %v1043_v25 = vsel %vm1033_vm5, %v843_v22, -inf }
 0x2e3   : > { %1044 = vmax.xlane.f32.xlu0 %v1043_v25  ;;  %v846_v26 = vpop.f32.mrb[14].mxu0 }
 0x2e4   : > { %v1935_v27 = vpop.f32.mrb[15].mxu0 }
 0x2e5   : > { %v2841_v28 = vpop.f32.mrb[12].mxu1 }
 0x2e6   : > { %v1940_v29 = vpop.f32.mrb[13].mxu1  ;;  %v1046_v54 = vsel %vm1033_vm5, %v2841_v28, -inf }
 0x2e7   : > { %v892_v30 = vpop.f32.mrb[14].mxu1 }
 0x2e8   : > { %v1941_v31 = vpop.f32.mrb[15].mxu1 }
 0x2e9   : > { %v935_v32 = vpop.f32.mrb[16].mxu0 }
 0x2ea   : > { %v1946_v33 = vpop.f32.mrb[17].mxu0  ;;  %v1049_v34 = vsel %vm1033_vm5, %v935_v32, -inf }
 0x2eb   : > { %1050 = vmax.xlane.f32.xlu0 %v1049_v34  ;;  %v938_v35 = vpop.f32.mrb[18].mxu0 }
 0x2ec   : > { %518 = vrot.lane.b32.xlu1 %v2768_v23, %s2424_s13  ;;  %v1947_v36 = vpop.f32.mrb[19].mxu0  ;;  %s338_s13 = scalar_lea.vmem [#allocation15], %s1785_s15 }
 0x2ed   : > { %v2846_v37 = vpop.f32.mrb[16].mxu1 }
 0x2ee   : > { %v1952_v38 = vpop.f32.mrb[17].mxu1  ;;  %v1052_v39 = vsel %vm1033_vm5, %v2846_v37, -inf }
 0x2ef   : > { %v984_v40 = vpop.f32.mrb[18].mxu1  ;;  %1053 = vmax.xlane.f32.xlu0 %v1052_v39 }
 0x2f0   : > { %v1953_v41 = vpop.f32.mrb[19].mxu1 }
 0x2f1   : > { %v2850_v42 = vpop.f32.mrb[20].mxu0 }
 0x2f2   : > { %v1958_v43 = vpop.f32.mrb[21].mxu0  ;;  %v1055_v44 = vsel %vm1033_vm5, %v2850_v42, -inf }
 0x2f3   : > { %1056 = vmax.xlane.f32.xlu0 %v1055_v44  ;;  %v1030_v45 = vpop.f32.mrb[22].mxu0 }
 0x2f4   : > { %v1959_v46 = vpop.f32.mrb[23].mxu0 }
 0x2f6   : > { %v1036_v47 = vpop.xlane.xlu0 %1035 }
 0x2f7   : > { %v1058_v48 = vsub.f32 %v705_v1, %v1036_v47 }
 0x2f9   : > { %v1066_v49 = vmul.f32 1.442695, %v1058_v48 }
 0x2fb   : > { %2145 = vpow2.f32 %v1066_v49 }
 0x305   : > { %v2854_v51 = vpop.eup %2145 }
 0x306   : > { %v1106_v52 = vpack.c.bf16 %v2854_v51, %v2854_v51  ;;  %v1082_v46 = vsel %vm1033_vm5, %v2854_v51, 0.0 }
 0x308   : > { %1963 = vmatmul.mubr.msk.bf16.vlgmr.msra.gmra.mrb[20].mxu1 %vm1033_vm5, %v1106_v52 }
 0x309   : > { %538 = vrot.lane.b32.xlu0 %v2768_v23, %s2426_s11  ;;  %1973 = vmatpush3.bf16.msra.mxu1 %v1219_v53 }
 0x30a   : > { %1974 = vmatprep.mubr.msk.bf16.mxu1 %vm2419_vm0, %v2418_v0  ;;  %1984 = vmatprep.subr.bf16.mxu1 %v2418_v0 }
 0x310   : > { %1047 = vmax.xlane.f32.xlu1 %v1046_v54 }
 0x321   : > { %528 = vrot.lane.b32.xlu1 %v2768_v23, %s2425_s9  ;;  %s1655_s9 = sshll.u32 %s338_s13, 4  ;;  %s2926_s9 = int_to_ptr.vmem [resolvable:$true] %s1655_s9 }
 0x322   : > { %s2319_s15 = scalar_lea.vmem %s2926_s9, 128 }
 0x323   : > { %p2320_p2 = scmp.ne.s32.totalorder %s2926_s9, %s2319_s15 }
 0x325   : > { %p2321_p10 = pnand %p2320_p2, %p3001_p9 }
 0x327   : > { %p2322_p1 = pneg %p2321_p10 }
 0x368   : > { %v1039_v55 = vpop.xlane.xlu1 %1038 }
 0x369   : > { %v1059_v56 = vsub.f32 %v751_v12, %v1039_v55 }
 0x36b   : > { %v1068_v57 = vmul.f32 1.442695, %v1059_v56 }
 0x36c   : > { %v1042_v58 = vpop.xlane.xlu0 %1041  ;;  %v519_v59 = vpop.permute.xlu1 %518 }
 0x36d   : > { %2147 = vpow2.f32 %v1068_v57  ;;  %v1060_v60 = vsub.f32 %v797_v17, %v1042_v58  ;;  %522 = vst.msk [vmem:[#allocation4 + $0x14] sm:$0xf] %vm464_vm2, %v519_v59 }
 0x36f   : > { %v1070_v61 = vmul.f32 1.442695, %v1060_v60 }
 0x370   : > { %v1045_v62 = vpop.xlane.xlu0 %1044 }
 0x371   : > { %2149 = vpow2.f32 %v1070_v61  ;;  %v1061_v63 = vsub.f32 %v843_v22, %v1045_v62 }
 0x373   : > { %v1072_v1 = vmul.f32 1.442695, %v1061_v63 }
 0x374   : > { %v1119_v16 = vld [vmem:[#allocation4 + $0x14] sm:$0xf] }
 0x375   : > { %2151 = vpow2.f32 %v1072_v1  ;;  %v1357_v21 = vsel %vm1125_vm4, %v1119_v16, 0 }
 0x377   : > { %v2148_v2 = vpop.eup %2147 }
 0x378   : > { %v1051_v4 = vpop.xlane.xlu0 %1050  ;;  %v1085_v23 = vsel %vm1033_vm5, %v2148_v2, 0.0  ;;  %v1107_v5 = vpack.c.bf16 %v2148_v2, %v2148_v2 }
 0x379   : > { %v1063_v6 = vsub.f32 %v935_v32, %v1051_v4  ;;  %1086 = vadd.xlane.f32.xlu1 %v1085_v23 }
 0x37a   : > { %1969 = vmatmul.mubr.msk.bf16.vlgmr.msra.gmra.mrb[24].mxu0 %vm1033_vm5, %v1107_v5 }
 0x37b   : > { %v2150_v8 = vpop.eup %2149  ;;  %v1076_v9 = vmul.f32 1.442695, %v1063_v6  ;;  %1979 = vmatpush3.bf16.msra.mxu0 %v1265_v7  ;;  %1980 = vmatprep.mubr.msk.bf16.mxu0 %vm2419_vm0, %v2418_v0 }
 0x37c   : > { %v1054_v11 = vpop.xlane.xlu0 %1053  ;;  %v1088_v12 = vsel %vm1033_vm5, %v2150_v8, 0.0  ;;  %v1108_v13 = vpack.c.bf16 %v2150_v8, %v2150_v8  ;;  %1990 = vmatprep.subr.bf16.mxu0 %v2418_v0 }
 0x37d   : > { %2153 = vpow2.f32 %v1076_v9  ;;  %1089 = vadd.xlane.f32.xlu0 %v1088_v12  ;;  %v1064_v34 = vsub.f32 %v2846_v37, %v1054_v11 }
 0x37e   : > { %1975 = vmatmul.mubr.msk.bf16.vlgmr.msra.gmra.mrb[24].mxu1 %vm1033_vm5, %v1108_v13 }
 0x37f   : > { %v2152_v15 = vpop.eup %2151  ;;  %1985 = vmatpush3.bf16.msra.mxu1 %v1311_v14  ;;  %1986 = vmatprep.mubr.msk.bf16.mxu1 %vm2419_vm0, %v2418_v0  ;;  %v1078_v38 = vmul.f32 1.442695, %v1064_v34 }
 0x380   : > { %v1057_v17 = vpop.xlane.xlu0 %1056  ;;  %v1091_v18 = vsel %vm1033_vm5, %v2152_v15, 0.0  ;;  %v1109_v19 = vpack.c.bf16 %v2152_v15, %v2152_v15  ;;  %1996 = vmatprep.subr.bf16.mxu1 %v2418_v0 }
 0x381   : > { %v1065_v20 = vsub.f32 %v2850_v42, %v1057_v17  ;;  %1092 = vadd.xlane.f32.xlu0 %v1091_v18 }
 0x382   : > { %1981 = vmatmul.mubr.msk.bf16.vlgmr.msra.gmra.mrb[28].mxu0 %vm1033_vm5, %v1109_v19 }
 0x383   : > { %v1080_v22 = vmul.f32 1.442695, %v1065_v20  ;;  %1991 = vmatpush3.bf16.msra.mxu0 %v1357_v21  ;;  %1992 = vmatprep.mubr.msk.bf16.mxu0 %vm2419_vm0, %v2418_v0 }
 0x384   : > { %v539_v24 = vpop.permute.xlu0 %538  ;;  %2002 = vmatprep.subr.bf16.mxu0 %v2418_v0 }
 0x385   : > { %2155 = vpow2.f32 %v1080_v22  ;;  %542 = vst.msk [vmem:[#allocation4 + $0x1c] sm:$0xf] %vm464_vm2, %v539_v24 }
 0x387   : > { %v2154_v25 = vpop.eup %2153 }
 0x388   : > { %v1097_v26 = vsel %vm1033_vm5, %v2154_v25, 0.0  ;;  %v1111_v27 = vpack.c.bf16 %v2154_v25, %v2154_v25 }
 0x389   : > { %1098 = vadd.xlane.f32.xlu0 %v1097_v26 }
 0x38a   : > { %1993 = vmatmul.mubr.msk.bf16.vlgmr.msra.gmra.mrb[32].mxu0 %vm1033_vm5, %v1111_v27 }
 0x38b   : > { %2004 = vmatprep.mubr.msk.bf16.mxu0 %vm2419_vm0, %v2418_v0 }
 0x38c   : > { %v1121_v29 = vld [vmem:[#allocation4 + $0x1c] sm:$0xf] }
 0x38d   : > { %v1449_v30 = vsel %vm1125_vm4, %v1121_v29, 0 }
 0x38e   : > { %2003 = vmatpush3.bf16.msra.mxu0 %v1449_v30 }
 0x38f   : > { %v2156_v31 = vpop.eup %2155 }
 0x390   : > { %v1103_v32 = vsel %vm1033_vm5, %v2156_v31, 0.0  ;;  %v1113_v33 = vpack.c.bf16 %v2156_v31, %v2156_v31 }
 0x391   : > { %1104 = vadd.xlane.f32.xlu0 %v1103_v32 }
 0x392   : > { %2005 = vmatmul.mubr.msk.bf16.vlgmr.msra.gmra.mrb[36].mxu0 %vm1033_vm5, %v1113_v33 }
 0x39d   : > { %v1048_v35 = vpop.xlane.xlu1 %1047 }
 0x39e   : > { %v1062_v36 = vsub.f32 %v2841_v28, %v1048_v35 }
 0x3a0   : > { %v1074_v39 = vmul.f32 1.442695, %v1062_v36 }
 0x3a1   : > { %v529_v40 = vpop.permute.xlu1 %528 }
 0x3a2   : > { %2157 = vpow2.f32 %v1074_v39  ;;  %532 = vst.msk [vmem:[#allocation4 + $0x18] sm:$0xf] %vm464_vm2, %v529_v40 }
 0x3a3   : > { %2159 = vpow2.f32 %v1078_v38 }
 0x3a9   : > { %v1120_v42 = vld [vmem:[#allocation4 + $0x18] sm:$0xf] }
 0x3aa   : > { %v1403_v37 = vsel %vm1125_vm4, %v1120_v42, 0 }
 0x3ac   : > { %v2158_v41 = vpop.eup %2157 }
 0x3ad   : > { %v1094_v43 = vsel %vm1033_vm5, %v2158_v41, 0.0  ;;  %v1110_v44 = vpack.c.bf16 %v2158_v41, %v2158_v41  ;;  %v2160_v45 = vpop.eup %2159  ;;  %v2143_v41 = vld [vmem:[#allocation14] sm:$0xff]  }
 0x3ae   : > { %1095 = vadd.xlane.f32.xlu1 %v1094_v43  ;;  %v1100_v28 = vsel %vm1033_vm5, %v2160_v45, 0.0  ;;  %v1112_v47 = vpack.c.bf16 %v2160_v45, %v2160_v45  ;;  %v2144_v45 = vld [vmem:[#allocation14 + $0x8] sm:$0xff]  }
 0x3af   : > { %1987 = vmatmul.mubr.msk.bf16.vlgmr.msra.gmra.mrb[28].mxu1 %vm1033_vm5, %v1110_v44 }
 0x3b0   : > { %1997 = vmatpush3.bf16.msra.mxu1 %v1403_v37  ;;  %1998 = vmatprep.mubr.msk.bf16.mxu1 %vm2419_vm0, %v2418_v0 }
 0x3b1   : > { %2008 = vmatprep.subr.bf16.mxu1 %v2418_v0 }
 0x3b2   : > { %1101 = vadd.xlane.f32.xlu1 %v1100_v28 }
 0x3b6   : > { %1083 = vadd.xlane.f32.xlu1 %v1082_v46 }
 0x3b7   : > { %1999 = vmatmul.mubr.msk.bf16.vlgmr.msra.gmra.mrb[32].mxu1 %vm1033_vm5, %v1112_v47 }
 0x3b8   : > { %2012 = vmatprep.mubr.msk.bf16.mxu1 %vm2419_vm0, %v2418_v0  ;;  %2009 = vmatpush3.bf16.msra.mxu1 %v2143_v41 }
 0x3b9   : > { %2010 = vmatprep.subr.bf16.mxu1 %v2418_v0 }
 0x3bc   : > { %2011 = vmatpush3.bf16.msra.mxu1 %v2144_v45 }
 0x3db   : > { %v1163_v48 = vpop.f32.mrb[20].mxu1 }
 0x3dc   : > { %v1964_v49 = vpop.f32.mrb[21].mxu1 }
 0x3dd   : > { %v1166_v50 = vpop.f32.mrb[22].mxu1 }
 0x3de   : > { %v1965_v52 = vpop.f32.mrb[23].mxu1 }
 0x406   : > { %v1087_v53 = vpop.xlane.xlu1 %1086 }
 0x407   : > { %2161 = vrcp.f32 %v1087_v53 }
 0x40a   : > { %v1090_v56 = vpop.xlane.xlu0 %1089 }
 0x40e   : > { %v1093_v51 = vpop.xlane.xlu0 %1092 }
 0x411   : > { %v2162_v58 = vpop.eup %2161 }
 0x416   : > { %v1099_v2 = vpop.xlane.xlu0 %1098 }
 0x41e   : > { %v1105_v17 = vpop.xlane.xlu0 %1104 }
 0x43b   : > { %v1096_v54 = vpop.xlane.xlu1 %1095 }
 0x43f   : > { %v1102_v55 = vpop.xlane.xlu1 %1101 }
 0x443   : > { %v1084_v57 = vpop.xlane.xlu1 %1083 }
 0x444   : > { %2163 = vrcp.f32 %v1084_v57 }
 0x445   : > { %2165 = vrcp.f32 %v1090_v56 }
 0x446   : > { %2167 = vrcp.f32 %v1093_v51 }
 0x447   : > { %2169 = vrcp.f32 %v1099_v2 }
 0x448   : > { %2171 = vrcp.f32 %v1105_v17 }
 0x449   : > { %2173 = vrcp.f32 %v1096_v54 }
 0x44a   : > { %2175 = vrcp.f32 %v1102_v55 }
 0x44d   : > { %v1209_v59 = vpop.f32.mrb[24].mxu0 }
 0x44e   : > { %v2164_v60 = vpop.eup %2163  ;;  %v1500_v61 = vmul.f32 %v2162_v58, %v1209_v59  ;;  %v1970_v62 = vpop.f32.mrb[25].mxu0  ;;  %v1826_v58 = vld [vmem:[%s2979_s5] ss:$0 sm:$0xff] }
 0x44f   : > { %v1499_v63 = vmul.f32 %v2164_v60, %v1163_v48  ;;  %v1212_v1 = vpop.f32.mrb[26].mxu0  ;;  %v2166_v23 = vpop.eup %2165 }
 0x450   : > { %v1837_v3 = vpack.c.bf16 %v1500_v61, %v1500_v61  ;;  %v1971_v4 = vpop.f32.mrb[27].mxu0  ;;  %v2168_v12 = vpop.eup %2167 }
 0x451   : > { %v1255_v5 = vpop.f32.mrb[24].mxu1  ;;  %v1507_v6 = vpack.c.bf16 %v1499_v63, %v1499_v63  ;;  %v2170_v20 = vpop.eup %2169 }
 0x452   : > { %v1501_v7 = vmul.f32 %v2166_v23, %v1255_v5  ;;  %v1976_v8 = vpop.f32.mrb[25].mxu1  ;;  %1519 = vrot.lane.b32.xlu0 %v1837_v3, %s2427_s20  ;;  %v2172_v29 = vpop.eup %2171 }
 0x453   : > { %v1258_v9 = vpop.f32.mrb[26].mxu1  ;;  %1515 = vst.msk [vmem:[#allocation5] sm:$0xf] %vm464_vm2, %v1507_v6  ;;  %v2174_v36 = vpop.eup %2173 }
 0x454   : > { %v1838_v10 = vpack.c.bf16 %v1501_v7, %v1501_v7  ;;  %v1977_v11 = vpop.f32.mrb[27].mxu1  ;;  %v2176_v37 = vpop.eup %2175 }
 0x455   : > { %v1301_v13 = vpop.f32.mrb[28].mxu0 }
 0x456   : > { %v1502_v14 = vmul.f32 %v2168_v12, %v1301_v13  ;;  %1527 = vrot.lane.b32.xlu1 %v1838_v10, %s2428_s8  ;;  %v1982_v15 = vpop.f32.mrb[29].mxu0  ;;  %s2924_s8 = scalar_lea.hbm %s2980_s6, %s1831_s27 }
 0x457   : > { %v1304_v16 = vpop.f32.mrb[30].mxu0 }
 0x458   : > { %v1839_v18 = vpack.c.bf16 %v1502_v14, %v1502_v14  ;;  %v1983_v19 = vpop.f32.mrb[31].mxu0 }
 0x45a   : > { %1535 = vrot.lane.b32.xlu1 %v1839_v18, %s2429_s30  ;;  %s2434_s30 = smov [#allocation15]  }
 0x45d   : > { %v1393_v21 = vpop.f32.mrb[32].mxu0 }
 0x45e   : > { %v1504_v22 = vmul.f32 %v2170_v20, %v1393_v21  ;;  %v1994_v24 = vpop.f32.mrb[33].mxu0 }
 0x45f   : > { %v1396_v25 = vpop.f32.mrb[34].mxu0 }
 0x460   : > { %v1841_v26 = vpack.c.bf16 %v1504_v22, %v1504_v22  ;;  %v1995_v27 = vpop.f32.mrb[35].mxu0 }
 0x462   : > { %1551 = vrot.lane.b32.xlu1 %v1841_v26, %s2430_s7  ;;  %s2323_s7 = sshll.u32 %s2434_s30, 4  ;;  %s2324_s7 = int_to_ptr.vmem [resolvable:$false] %s2323_s7 }
 0x463   : > { %p2326_p0 = scmp.lt.s32.totalorder %s2926_s9, %s2324_s7 }
 0x465   : > { %v1485_v30 = vpop.f32.mrb[36].mxu0 }
 0x466   : > { %v1506_v31 = vmul.f32 %v2172_v29, %v1485_v30  ;;  %v2006_v32 = vpop.f32.mrb[37].mxu0 }
 0x467   : > { %v1488_v33 = vpop.f32.mrb[38].mxu0 }
 0x468   : > { %v1843_v34 = vpack.c.bf16 %v1506_v31, %v1506_v31  ;;  %v2007_v35 = vpop.f32.mrb[39].mxu0 }
 0x46a   : > { %1567 = vrot.lane.b32.xlu1 %v1843_v34, %s2431_s12  ;;  %s2325_s12 = scalar_lea.vmem %s2324_s7, 256 }
 0x46b   : > { %p2327_p7 = scmp.lt.s32.totalorder %s2325_s12, %s2319_s15 }
 0x46d   : > { %p2328_p5 = por %p2327_p7, %p2326_p0 }
 0x46f   : > { %p2329_p8 = pnand %p2328_p5, %p2322_p1 }
 0x482   : > { %v1347_v38 = vpop.f32.mrb[28].mxu1 }
 0x483   : > { %v1503_v39 = vmul.f32 %v2174_v36, %v1347_v38  ;;  %v1988_v40 = vpop.f32.mrb[29].mxu1 }
 0x484   : > { %v1350_v42 = vpop.f32.mrb[30].mxu1 }
 0x485   : > { %v1840_v43 = vpack.c.bf16 %v1503_v39, %v1503_v39  ;;  %v1989_v44 = vpop.f32.mrb[31].mxu1 }
 0x487   : > { %1543 = vrot.lane.b32.xlu0 %v1840_v43, %s2432_s10 }
 0x48a   : > { %v1439_v28 = vpop.f32.mrb[32].mxu1 }
 0x48b   : > { %v1505_v46 = vmul.f32 %v2176_v37, %v1439_v28  ;;  %v2000_v47 = vpop.f32.mrb[33].mxu1 }
 0x48c   : > { %v1442_v48 = vpop.f32.mrb[34].mxu1 }
 0x48d   : > { %v1842_v49 = vpack.c.bf16 %v1505_v46, %v1505_v46  ;;  %v2001_v50 = vpop.f32.mrb[35].mxu1 }
 0x48f   : > { %1559 = vrot.lane.b32.xlu0 %v1842_v49, %s2433_s28 }
 0x4c4   : > { %v1520_v52 = vpop.permute.xlu0 %1519 }
 0x4c5   : > { %1523 = vst.msk [vmem:[#allocation5] sm:$0xf] %vm1522_vm6, %v1520_v52 }
 0x4c8   : > { %v1528_v53 = vpop.permute.xlu1 %1527 }
 0x4c9   : > { %1531 = vst.msk [vmem:[#allocation5] sm:$0xf] %vm1530_vm7, %v1528_v53 }
 0x4cc   : > { %v1536_v0 = vpop.permute.xlu1 %1535 }
 0x4cd   : > { %1539 = vst.msk [vmem:[#allocation5] sm:$0xf] %vm1538_vm8, %v1536_v0 }
 0x4d4   : > { %v1552_v55 = vpop.permute.xlu1 %1551 }
 0x4dc   : > { %v1568_v57 = vpop.permute.xlu1 %1567 }
 0x4f9   : > { %v1544_v54 = vpop.permute.xlu0 %1543 }
 0x4fa   : > { %1547 = vst.msk [vmem:[#allocation5] sm:$0xf] %vm1546_vm9, %v1544_v54 }
 0x4fb   : > { %1555 = vst.msk [vmem:[#allocation5] sm:$0xf] %vm1554_vm10, %v1552_v55 }
 0x501   : > { %v1560_v56 = vpop.permute.xlu0 %1559 }
 0x502   : > { %1563 = vst.msk [vmem:[#allocation5] sm:$0xf] %vm1562_vm11, %v1560_v56 }
 0x503   : > { %1571 = vst.msk [vmem:[#allocation5] sm:$0xf] %vm1570_vm12, %v1568_v57 }
 0x50a   : > { %v1572_v51 = vld [vmem:[#allocation5] sm:$0xf] }
 0x50b   : > { %2013 = vmatmul.mubr.msk.bf16.vlgmr.msra.gmra.mrb[36].mxu1 %vm362_vm1, %v1572_v51 }
 0x5de   : > { %v1633_v59 = vpop.f32.mrb[36].mxu1 }
 0x5df   : > { %v1634_v60 = vadd.f32 %v1826_v58, %v1633_v59  ;;  %v2014_v61 = vpop.f32.mrb[37].mxu1 }
 0x5e0   : > { %v1636_v62 = vpop.f32.mrb[38].mxu1 }
 0x5e1   : > { %v2015_v63 = vpop.f32.mrb[39].mxu1  ;;  %1639 = vst.msk [vmem:[%s338_s13] sm:$0xff] %vm362_vm1, %v1634_v60 }
 0x5e2   : > { %2332 = shalt.err (!%p2329_p8)
}
 0x5e3   : > { %s2333_s1 = scalar_lea.hbm %s2924_s8, 128  ;;  %s2337_s29 = scalar_lea.hbm %s2980_s6, 256 }
 0x5e4   : > { %p2334_p3 = scmp.ne.s32.totalorder %s2924_s8, %s2333_s1  ;;  %p2338_p13 = scmp.lt.u32.totalorder %s2924_s8, %s2980_s6 }
 0x5e5   : > { %p2339_p12 = scmp.lt.u32.totalorder %s2337_s29, %s2333_s1  ;;  %p2341_p2 = scmp.lt.u32.totalorder %s2333_s1, %s2924_s8 }
 0x5e6   : > { %p2335_p11 = pnand %p2334_p3, %p3001_p9 }
 0x5e7   : > { %p2340_p4 = por %p2339_p12, %p2338_p13 }
 0x5e8   : > { %p2336_p6 = pneg %p2335_p11 }
 0x5e9   : > { %p2342_p10 = por %p2341_p2, %p2340_p4 }
 0x5eb   : > { %p2343_p1 = pnand %p2342_p10, %p2336_p6 }
 0x5ed   : > { %2346 = shalt.err (!%p2343_p1)
}
 0x5ee   : > { %2034 = dma.vmem_to_hbm [thread:$0]  (%p3001_p9), %s2926_s9, 128, %s2924_s8, %s1641_s24  }
 0x5ef PF: > { %s1667_s13 = sand.u32 1, %s2389_s21   ;;  %p3002_p0 = scmp.ne.s32.totalorder %s2997_s19, 0 }
 0x5f0   : > { %p3003_p7 = scmp.ge.s32.totalorder %s2409_s26, 2  ;;  %s1668_s11 = scalar_lea.sflag [#allocation8], %s1667_s13 }
 0x5f2   : > { %p2054_p5 = pnand %p3003_p7, %p3002_p0 }
 0x5f4   : > { %2384 = dma.done.wait (!%p2054_p5), %s1668_s11, 128  }
 0x5f5   : > { %2386 = vsyncadd (!%p2054_p5), %s1668_s11, 4294967168  ;;  %s24_s26 = sadd.s32 1, %s2409_s26   ;;  %s3004_s21 = smov %s2393_s22 }
 0x5f6   : > { %p21_p8 = scmp.ge.s32.totalorder %s24_s26, 4   ;;  %s3005_s22 = smov %s2397_s23 }
 0x5f7   : > { %s3006_s23 = smov %s2658_s17  ;;  %s3007_s24 = smov %s2405_s25 }
 0x5f8   : > { %s3008_s25 = smov %s3010_s18  ;;  %23 = sbr.rel (!%p21_p8) target bundleno = 10 (0xa), region = 131 }
 0x5ff   :  { %1673 = vsyncpa [#allocation7], 1 }
 0x600   :  { %1675 = vsyncpa [#allocation7 + $0x1], 1 }
 0x601   :  { %1676 = vsyncpa [#allocation10], 1 }
 0x602   :  { %1677 = vsyncpa [#allocation13], 1 }
 0x603   :  { %1678 = vsyncpa [#allocation8], 1 }
 0x604   :  { %1680 = vsyncpa [#allocation8 + $0x1], 1 }

</bundles_post_ra>
